<compile_context>
chip_gen: v7x
topology: tpu7x:2x2x1
jax: 0.10.0
libtpu: 0.0.40
codegen_flags: <defaults>
</compile_context>

<pallas_src>
import jax
import jax.numpy as jnp
from jax.experimental import pallas as pl
from jax.experimental.pallas import tpu as pltpu


# ----------------------------------------------------------------------------
# helpers
# ----------------------------------------------------------------------------
def _round_up(a, b):
    return ((a + b - 1) // b) * b


def _pad_features(f):
    """Lane-density policy: round the feature (lane) dim up to a multiple of 128
    when the padding overhead is <= 2x; otherwise keep it as-is."""
    fp = _round_up(f, 128)
    return fp if fp <= 2 * f else f


# ----------------------------------------------------------------------------
# Pallas kernels: o = relu(x @ w (+ x2 @ w2) + b), f32 accumulate / epilogue
# ----------------------------------------------------------------------------
def _mm1_bias_relu_kernel(x_ref, w_ref, b_ref, o_ref):
    acc = jnp.dot(x_ref[...], w_ref[...], preferred_element_type=jnp.float32)
    acc = acc + b_ref[...]
    o_ref[...] = jnp.maximum(acc, 0.0).astype(o_ref.dtype)


def _mm2_bias_relu_kernel(xa_ref, wa_ref, xb_ref, wb_ref, b_ref, o_ref):
    # Fused channel-concat: cat([a, b], C) @ W == a @ Wa + b @ Wb.  The
    # concatenated activation never round-trips HBM.
    acc = jnp.dot(xa_ref[...], wa_ref[...], preferred_element_type=jnp.float32)
    acc = acc + jnp.dot(xb_ref[...], wb_ref[...], preferred_element_type=jnp.float32)
    acc = acc + b_ref[...]
    o_ref[...] = jnp.maximum(acc, 0.0).astype(o_ref.dtype)


def fused_matmul_bias_relu(operands, bias, out_dtype=jnp.bfloat16, tp_max=512):
    """relu(sum_i x_i @ w_i + bias).

    operands: list of 1 or 2 pairs (x_i [P, K_i], w_i [K_i, F]); bias: [F].
    Returns [P, F] in out_dtype.  The row (pixel) dim P is tiled with a 1-D
    "parallel" grid so HBM<->VMEM DMAs pipeline and rows shard across both
    TensorCores on v7x; weights/bias stay resident in VMEM across the grid.
    """
    assert len(operands) in (1, 2)
    P = operands[0][0].shape[0]
    F = operands[0][1].shape[1]

    tp = min(tp_max, _round_up(P, 128))      # row tile: multiple of 128, <= 512
    p_pad = _round_up(P, tp)

    xs, ws, ks = [], [], []
    for x, w in operands:
        assert x.shape[0] == P and w.shape[1] == F and x.shape[1] == w.shape[0]
        ks.append(x.shape[1])
        x = x.astype(jnp.bfloat16)           # feed the MXU bf16
        if p_pad != P:
            x = jnp.pad(x, ((0, p_pad - P), (0, 0)))
        xs.append(x)
        ws.append(w.astype(jnp.bfloat16))
    b = bias.astype(jnp.float32).reshape(1, F)

    in_specs, args = [], []
    for x, w, k in zip(xs, ws, ks):
        in_specs.append(pl.BlockSpec((tp, k), lambda i: (i, 0)))   # row tile
        in_specs.append(pl.BlockSpec((k, F), lambda i: (0, 0)))    # resident weight
        args.extend([x, w])
    in_specs.append(pl.BlockSpec((1, F), lambda i: (0, 0)))        # resident bias
    args.append(b)

    out_itemsize = jnp.dtype(out_dtype).itemsize
    flops = sum(2 * p_pad * k * F for k in ks)
    bytes_accessed = (sum(x.size * 2 for x in xs) + sum(w.size * 2 for w in ws)
                      + b.size * 4 + p_pad * F * out_itemsize)

    # VMEM budget: double-buffered row/out tiles + resident weights + f32 acc,
    # with 2x headroom, clamped to v7x's 64 MiB physical VMEM.
    need = (sum(2 * tp * k * 2 + 2 * k * F * 2 for k in ks)
            + 2 * F * 4 + 2 * tp * F * out_itemsize + 2 * tp * F * 4)
    vmem_limit = int(min(max(2 * need, 32 * 2**20), 64 * 2**20))

    # TODO(synk): add an innermost "arbitrary" K-reduction grid axis with a f32
    # VMEM scratch accumulator (pl.when init/finalize) once K = 9*Cin >= ~2048.
    kernel = _mm1_bias_relu_kernel if len(operands) == 1 else _mm2_bias_relu_kernel
    out = pl.pallas_call(
        kernel,
        out_shape=jax.ShapeDtypeStruct((p_pad, F), out_dtype),
        grid=(p_pad // tp,),
        in_specs=in_specs,
        out_specs=pl.BlockSpec((tp, F), lambda i: (i, 0)),
        compiler_params=pltpu.CompilerParams(
            dimension_semantics=("parallel",),
            vmem_limit_bytes=vmem_limit),
        cost_estimate=pl.CostEstimate(
            flops=flops, transcendentals=0, bytes_accessed=bytes_accessed),
    )(*args)
    return out[:P] if p_pad != P else out


# ----------------------------------------------------------------------------
# Building blocks (glue is plain JAX: slicing, patch extraction, transposes)
# ----------------------------------------------------------------------------
def conv_transpose2x2_relu(x_nchw, w_iohw, b):
    """ConvTranspose2d(kernel=2, stride=2) + ReLU as one Pallas matmul.
    w_iohw: [Cin, Cout, 2, 2] (PyTorch layout), b: [Cout].
    Returns NHWC bf16 [N, 2H, 2W, C2p] (pad channels, if any, are exactly 0)."""
    N, Cin, H, W = x_nchw.shape
    C2 = w_iohw.shape[1]
    C2p = _pad_features(C2)
    x_flat = jnp.transpose(x_nchw, (0, 2, 3, 1)).reshape(N * H * W, Cin)
    w = w_iohw
    if C2p != C2:
        w = jnp.pad(w, ((0, 0), (0, C2p - C2), (0, 0), (0, 0)))
    # out[n, 2i+ki, 2j+kj, co] = relu(sum_ci x[n,i,j,ci] * W[ci,co,ki,kj] + b[co])
    w_flat = jnp.transpose(w, (0, 2, 3, 1)).reshape(Cin, 4 * C2p)  # (ci) x (ki,kj,co)
    b_flat = jnp.tile(jnp.pad(b, (0, C2p - C2)), 4)
    y = fused_matmul_bias_relu([(x_flat, w_flat)], b_flat, out_dtype=jnp.bfloat16)
    # Pixel-shuffle the (ki,kj) sub-pixel blocks into the 2H x 2W image.
    # TODO(synk): fold the (ki,kj) offsets into the next conv's index_map (or do
    # strided in-kernel stores) to kill this XLA relayout at production sizes.
    y = y.reshape(N, H, W, 2, 2, C2p)
    y = jnp.transpose(y, (0, 1, 3, 2, 4, 5)).reshape(N, 2 * H, 2 * W, C2p)
    return y, C2p


def central_crop_nchw(x, fraction):
    """Exact CentralCrop semantics (int() truncation like the PyTorch module)."""
    if fraction == 1.0:
        return x
    _, _, h, w = x.shape
    start_h = int((h - h * fraction) / 2)
    end_h = start_h + int(h * fraction)
    start_w = int((w - w * fraction) / 2)
    end_w = start_w + int(w * fraction)
    return x[:, :, start_h:end_h, start_w:end_w]


def _im2col_3x3(x_nhwc):
    """3x3 valid-conv patches, tap-major (dy, dx, c) along the feature axis.
    Runs in bf16 so the 9x patch blow-up costs half the HBM bytes.
    # TODO(synk): replace with an in-kernel tap-reduction grid axis (pl.Element
    # row/col offsets + f32 scratch accumulator) to remove the 9x blow-up."""
    N, H, W, C = x_nhwc.shape
    Ho, Wo = H - 2, W - 2
    cols = jnp.concatenate(
        [x_nhwc[:, dy:dy + Ho, dx:dx + Wo, :] for dy in range(3) for dx in range(3)],
        axis=-1)                                     # [N, Ho, Wo, 9*C]
    return cols.reshape(N * Ho * Wo, 9 * C), (N, Ho, Wo)


def _conv_w_mat(w_oihw, f_pad):
    """[Cout, Cin, 3, 3] -> [9*Cin, f_pad], tap-major (dy, dx, ci) rows,
    zero-padded output lanes."""
    Co, Ci = w_oihw.shape[:2]
    m = jnp.transpose(w_oihw, (2, 3, 1, 0)).reshape(9 * Ci, Co)
    if f_pad != Co:
        m = jnp.pad(m, ((0, 0), (0, f_pad - Co)))
    return m


# ----------------------------------------------------------------------------
# Up2 forward (ReLU after the deconv and no BatchNorm: matches the reference)
# ----------------------------------------------------------------------------
def up2_forward(x1_nchw, x2_nchw, params):
    factor = 104.0 / 136.0
    in_ch = x1_nchw.shape[1]
    mid = params["c1_w"].shape[0]
    out_ch = params["c2_w"].shape[0]
    C2 = in_ch // 2

    # x1 = relu(up(x1))
    x1_up, C2p = conv_transpose2x2_relu(x1_nchw, params["up_w"], params["up_b"])

    # x2 = center_crop(x2)
    x2_c = central_crop_nchw(x2_nchw, factor)
    x2_c = jnp.transpose(x2_c, (0, 2, 3, 1)).astype(jnp.bfloat16)     # NHWC bf16

    # conv1 of DoubleConv, with the channel concat fused into the kernel:
    # split c1_w along its input channels ([x1_up | x2] concat order) and
    # accumulate two matmuls into one f32 accumulator.
    midp = _pad_features(mid)
    w1 = params["c1_w"]                                               # [mid, 2*C2, 3, 3]
    w1a = w1[:, :C2]
    if C2p != C2:
        w1a = jnp.pad(w1a, ((0, 0), (0, C2p - C2), (0, 0), (0, 0)))
    w1b = w1[:, C2:]
    wa = _conv_w_mat(w1a, midp)
    wb = _conv_w_mat(w1b, midp)
    b1 = jnp.pad(params["c1_b"], (0, midp - mid))
    cols_a, (N, Ho, Wo) = _im2col_3x3(x1_up)
    cols_b, _ = _im2col_3x3(x2_c)
    h1 = fused_matmul_bias_relu([(cols_a, wa), (cols_b, wb)], b1,
                                out_dtype=jnp.bfloat16)
    h1 = h1.reshape(N, Ho, Wo, midp)       # padded channels (if any) are zero

    # conv2 of DoubleConv (padded mid-channels flow in as zero weight rows).
    outp = _pad_features(out_ch)
    w2 = params["c2_w"]                                               # [out, mid, 3, 3]
    if midp != mid:
        w2 = jnp.pad(w2, ((0, 0), (0, midp - mid), (0, 0), (0, 0)))
    w2m = _conv_w_mat(w2, outp)
    b2 = jnp.pad(params["c2_b"], (0, outp - out_ch))
    cols2, (N, H2, W2) = _im2col_3x3(h1)
    y = fused_matmul_bias_relu([(cols2, w2m)], b2, out_dtype=jnp.float32)
    y = y.reshape(N, H2, W2, outp)[..., :out_ch]
    return jnp.transpose(y, (0, 3, 1, 2))                             # NCHW f32


def init_params(key, in_channels, out_channels):
    ks = jax.random.split(key, 6)
    mid = out_channels  # DoubleConv default mid_channels
    return {
        # ConvTranspose2d(in, in//2, k=2, s=2): weight [Cin, Cout, 2, 2]
        "up_w": 0.1 * jax.random.normal(ks[0], (in_channels, in_channels // 2, 2, 2), jnp.float32),
        "up_b": 0.1 * jax.random.normal(ks[1], (in_channels // 2,), jnp.float32),
        # Conv2d(in, mid, 3): weight [Cout, Cin, 3, 3]
        "c1_w": 0.1 * jax.random.normal(ks[2], (mid, in_channels, 3, 3), jnp.float32),
        "c1_b": 0.1 * jax.random.normal(ks[3], (mid,), jnp.float32),
        # Conv2d(mid, out, 3)
        "c2_w": 0.1 * jax.random.normal(ks[4], (out_channels, mid, 3, 3), jnp.float32),
        "c2_b": 0.1 * jax.random.normal(ks[5], (out_channels,), jnp.float32),
    }


if __name__ == "__main__":
    in_channels, out_channels = 4, 4
    key = jax.random.PRNGKey(0)
    k1, k2, kp = jax.random.split(key, 3)

    # x1: [N, Cin, 8, 8]      -> up   -> [N, Cin//2, 16, 16]
    # x2: [N, Cin//2, 21, 21] -> crop -> [N, Cin//2, 16, 16]
    x1 = jax.random.normal(k1, (2, in_channels, 8, 8), jnp.float32)
    x2 = jax.random.normal(k2, (2, in_channels // 2, 21, 21), jnp.float32)
    params = init_params(kp, in_channels, out_channels)

    out = jax.jit(lambda a, b: up2_forward(a, b, params))(x1, x2)
    out = jax.block_until_ready(out)
    assert out.shape == (2, out_channels, 12, 12), out.shape
    print("KERNEL_OK")
</pallas_src>

<mosaic_0001>
module attributes {stable_mosaic.version = 11 : i64} {
  func.func @_mm1_bias_relu_kernel(%arg0: i32, %arg1: memref<128x4xbf16, #tpu.memory_space<vmem>>, %arg2: memref<4x8xbf16, #tpu.memory_space<vmem>>, %arg3: memref<1x8xf32, #tpu.memory_space<vmem>>, %arg4: memref<128x8xbf16, #tpu.memory_space<vmem>>) attributes {dimension_semantics = [#tpu.dimension_semantics<parallel>], iteration_bounds = array<i64: 1>, scalar_prefetch = 0 : i64, scratch_operands = 0 : i64, tpu.core_type = #tpu.core_type<tc>, window_params = [{transform_indices = @transform_0, window_bounds = array<i64: 128, 4>}, {pipeline_mode = #tpu.pipeline_mode<synchronous>, transform_indices = @transform_1, window_bounds = array<i64: 4, 8>}, {pipeline_mode = #tpu.pipeline_mode<synchronous>, transform_indices = @transform_2, window_bounds = array<i64: 1, 8>}, {transform_indices = @transform_3, window_bounds = array<i64: 128, 8>}]} {
    %c0 = arith.constant 0 : index
    %c0_0 = arith.constant 0 : index
    %0 = vector.load %arg1[%c0, %c0_0] : memref<128x4xbf16, #tpu.memory_space<vmem>>, vector<128x4xbf16>
    %c0_1 = arith.constant 0 : index
    %c0_2 = arith.constant 0 : index
    %1 = vector.load %arg2[%c0_1, %c0_2] : memref<4x8xbf16, #tpu.memory_space<vmem>>, vector<4x8xbf16>
    %cst = arith.constant dense<0.000000e+00> : vector<128x8xf32>
    %2 = tpu.matmul %0, %1, %cst {dimension_numbers = #tpu.dot_dimension_numbers<[1], [0], [0], [1], [0, 0, 1, 1], [], []>} : vector<128x4xbf16>, vector<4x8xbf16>, vector<128x8xf32> -> vector<128x8xf32>
    %c0_3 = arith.constant 0 : index
    %c0_4 = arith.constant 0 : index
    %3 = vector.load %arg3[%c0_3, %c0_4] : memref<1x8xf32, #tpu.memory_space<vmem>>, vector<1x8xf32>
    %4 = vector.broadcast %3 : vector<1x8xf32> to vector<128x8xf32>
    %5 = arith.addf %2, %4 : vector<128x8xf32>
    %cst_5 = arith.constant 0.000000e+00 : f32
    %6 = vector.broadcast %cst_5 : f32 to vector<128x8xf32>
    %7 = arith.maximumf %5, %6 : vector<128x8xf32>
    %8 = arith.truncf %7 : vector<128x8xf32> to vector<128x8xbf16>
    %c0_6 = arith.constant 0 : index
    %c0_7 = arith.constant 0 : index
    %9 = vector.load %arg4[%c0_6, %c0_7] : memref<128x8xbf16, #tpu.memory_space<vmem>>, vector<128x8xbf16>
    tpu.vector_store %arg4[%c0_6, %c0_7], %8 {strides = array<i32>} : memref<128x8xbf16, #tpu.memory_space<vmem>>, vector<128x8xbf16>,
    return
  }
  func.func @transform_0(%arg0: i32) -> (i32, i32) {
    %c0_i32 = arith.constant 0 : i32
    %c0_i32_0 = arith.constant 0 : i32
    return %arg0, %c0_i32 : i32, i32
  }
  func.func @transform_1(%arg0: i32) -> (i32, i32) {
    %c0_i32 = arith.constant 0 : i32
    %c0_i32_0 = arith.constant 0 : i32
    %c0_i32_1 = arith.constant 0 : i32
    return %c0_i32, %c0_i32_0 : i32, i32
  }
  func.func @transform_2(%arg0: i32) -> (i32, i32) {
    %c0_i32 = arith.constant 0 : i32
    %c0_i32_0 = arith.constant 0 : i32
    %c0_i32_1 = arith.constant 0 : i32
    return %c0_i32, %c0_i32_0 : i32, i32
  }
  func.func @transform_3(%arg0: i32) -> (i32, i32) {
    %c0_i32 = arith.constant 0 : i32
    %c0_i32_0 = arith.constant 0 : i32
    return %arg0, %c0_i32 : i32, i32
  }
}

module attributes {stable_mosaic.version = 11 : i64} {
  func.func @_mm2_bias_relu_kernel(%arg0: i32, %arg1: memref<512x18xbf16, #tpu.memory_space<vmem>>, %arg2: memref<18x4xbf16, #tpu.memory_space<vmem>>, %arg3: memref<512x18xbf16, #tpu.memory_space<vmem>>, %arg4: memref<18x4xbf16, #tpu.memory_space<vmem>>, %arg5: memref<1x4xf32, #tpu.memory_space<vmem>>, %arg6: memref<512x4xbf16, #tpu.memory_space<vmem>>) attributes {dimension_semantics = [#tpu.dimension_semantics<parallel>], iteration_bounds = array<i64: 1>, scalar_prefetch = 0 : i64, scratch_operands = 0 : i64, tpu.core_type = #tpu.core_type<tc>, window_params = [{transform_indices = @transform_0, window_bounds = array<i64: 512, 18>}, {pipeline_mode = #tpu.pipeline_mode<synchronous>, transform_indices = @transform_1, window_bounds = array<i64: 18, 4>}, {transform_indices = @transform_2, window_bounds = array<i64: 512, 18>}, {pipeline_mode = #tpu.pipeline_mode<synchronous>, transform_indices = @transform_3, window_bounds = array<i64: 18, 4>}, {pipeline_mode = #tpu.pipeline_mode<synchronous>, transform_indices = @transform_4, window_bounds = array<i64: 1, 4>}, {transform_indices = @transform_5, window_bounds = array<i64: 512, 4>}]} {
    %c0 = arith.constant 0 : index
    %c0_0 = arith.constant 0 : index
    %0 = vector.load %arg1[%c0, %c0_0] : memref<512x18xbf16, #tpu.memory_space<vmem>>, vector<512x18xbf16>
    %c0_1 = arith.constant 0 : index
    %c0_2 = arith.constant 0 : index
    %1 = vector.load %arg2[%c0_1, %c0_2] : memref<18x4xbf16, #tpu.memory_space<vmem>>, vector<18x4xbf16>
    %cst = arith.constant dense<0.000000e+00> : vector<512x4xf32>
    %2 = tpu.matmul %0, %1, %cst {dimension_numbers = #tpu.dot_dimension_numbers<[1], [0], [0], [1], [0, 0, 1, 1], [], []>} : vector<512x18xbf16>, vector<18x4xbf16>, vector<512x4xf32> -> vector<512x4xf32>
    %c0_3 = arith.constant 0 : index
    %c0_4 = arith.constant 0 : index
    %3 = vector.load %arg3[%c0_3, %c0_4] : memref<512x18xbf16, #tpu.memory_space<vmem>>, vector<512x18xbf16>
    %c0_5 = arith.constant 0 : index
    %c0_6 = arith.constant 0 : index
    %4 = vector.load %arg4[%c0_5, %c0_6] : memref<18x4xbf16, #tpu.memory_space<vmem>>, vector<18x4xbf16>
    %cst_7 = arith.constant dense<0.000000e+00> : vector<512x4xf32>
    %5 = tpu.matmul %3, %4, %cst_7 {dimension_numbers = #tpu.dot_dimension_numbers<[1], [0], [0], [1], [0, 0, 1, 1], [], []>} : vector<512x18xbf16>, vector<18x4xbf16>, vector<512x4xf32> -> vector<512x4xf32>
    %6 = arith.addf %2, %5 : vector<512x4xf32>
    %c0_8 = arith.constant 0 : index
    %c0_9 = arith.constant 0 : index
    %7 = vector.load %arg5[%c0_8, %c0_9] : memref<1x4xf32, #tpu.memory_space<vmem>>, vector<1x4xf32>
    %8 = vector.broadcast %7 : vector<1x4xf32> to vector<512x4xf32>
    %9 = arith.addf %6, %8 : vector<512x4xf32>
    %cst_10 = arith.constant 0.000000e+00 : f32
    %10 = vector.broadcast %cst_10 : f32 to vector<512x4xf32>
    %11 = arith.maximumf %9, %10 : vector<512x4xf32>
    %12 = arith.truncf %11 : vector<512x4xf32> to vector<512x4xbf16>
    %c0_11 = arith.constant 0 : index
    %c0_12 = arith.constant 0 : index
    %13 = vector.load %arg6[%c0_11, %c0_12] : memref<512x4xbf16, #tpu.memory_space<vmem>>, vector<512x4xbf16>
    tpu.vector_store %arg6[%c0_11, %c0_12], %12 {strides = array<i32>} : memref<512x4xbf16, #tpu.memory_space<vmem>>, vector<512x4xbf16>,
    return
  }
  func.func @transform_0(%arg0: i32) -> (i32, i32) {
    %c0_i32 = arith.constant 0 : i32
    %c0_i32_0 = arith.constant 0 : i32
    return %arg0, %c0_i32 : i32, i32
  }
  func.func @transform_1(%arg0: i32) -> (i32, i32) {
    %c0_i32 = arith.constant 0 : i32
    %c0_i32_0 = arith.constant 0 : i32
    %c0_i32_1 = arith.constant 0 : i32
    return %c0_i32, %c0_i32_0 : i32, i32
  }
  func.func @transform_2(%arg0: i32) -> (i32, i32) {
    %c0_i32 = arith.constant 0 : i32
    %c0_i32_0 = arith.constant 0 : i32
    return %arg0, %c0_i32 : i32, i32
  }
  func.func @transform_3(%arg0: i32) -> (i32, i32) {
    %c0_i32 = arith.constant 0 : i32
    %c0_i32_0 = arith.constant 0 : i32
    %c0_i32_1 = arith.constant 0 : i32
    return %c0_i32, %c0_i32_0 : i32, i32
  }
  func.func @transform_4(%arg0: i32) -> (i32, i32) {
    %c0_i32 = arith.constant 0 : i32
    %c0_i32_0 = arith.constant 0 : i32
    %c0_i32_1 = arith.constant 0 : i32
    return %c0_i32, %c0_i32_0 : i32, i32
  }
  func.func @transform_5(%arg0: i32) -> (i32, i32) {
    %c0_i32 = arith.constant 0 : i32
    %c0_i32_0 = arith.constant 0 : i32
    return %arg0, %c0_i32 : i32, i32
  }
}

module attributes {stable_mosaic.version = 11 : i64} {
  func.func @_mm1_bias_relu_kernel(%arg0: i32, %arg1: memref<384x36xbf16, #tpu.memory_space<vmem>>, %arg2: memref<36x4xbf16, #tpu.memory_space<vmem>>, %arg3: memref<1x4xf32, #tpu.memory_space<vmem>>, %arg4: memref<384x4xf32, #tpu.memory_space<vmem>>) attributes {dimension_semantics = [#tpu.dimension_semantics<parallel>], iteration_bounds = array<i64: 1>, scalar_prefetch = 0 : i64, scratch_operands = 0 : i64, tpu.core_type = #tpu.core_type<tc>, window_params = [{transform_indices = @transform_0, window_bounds = array<i64: 384, 36>}, {pipeline_mode = #tpu.pipeline_mode<synchronous>, transform_indices = @transform_1, window_bounds = array<i64: 36, 4>}, {pipeline_mode = #tpu.pipeline_mode<synchronous>, transform_indices = @transform_2, window_bounds = array<i64: 1, 4>}, {transform_indices = @transform_3, window_bounds = array<i64: 384, 4>}]} {
    %c0 = arith.constant 0 : index
    %c0_0 = arith.constant 0 : index
    %0 = vector.load %arg1[%c0, %c0_0] : memref<384x36xbf16, #tpu.memory_space<vmem>>, vector<384x36xbf16>
    %c0_1 = arith.constant 0 : index
    %c0_2 = arith.constant 0 : index
    %1 = vector.load %arg2[%c0_1, %c0_2] : memref<36x4xbf16, #tpu.memory_space<vmem>>, vector<36x4xbf16>
    %cst = arith.constant dense<0.000000e+00> : vector<384x4xf32>
    %2 = tpu.matmul %0, %1, %cst {dimension_numbers = #tpu.dot_dimension_numbers<[1], [0], [0], [1], [0, 0, 1, 1], [], []>} : vector<384x36xbf16>, vector<36x4xbf16>, vector<384x4xf32> -> vector<384x4xf32>
    %c0_3 = arith.constant 0 : index
    %c0_4 = arith.constant 0 : index
    %3 = vector.load %arg3[%c0_3, %c0_4] : memref<1x4xf32, #tpu.memory_space<vmem>>, vector<1x4xf32>
    %4 = vector.broadcast %3 : vector<1x4xf32> to vector<384x4xf32>
    %5 = arith.addf %2, %4 : vector<384x4xf32>
    %cst_5 = arith.constant 0.000000e+00 : f32
    %6 = vector.broadcast %cst_5 : f32 to vector<384x4xf32>
    %7 = arith.maximumf %5, %6 : vector<384x4xf32>
    %c0_6 = arith.constant 0 : index
    %c0_7 = arith.constant 0 : index
    %8 = vector.load %arg4[%c0_6, %c0_7] : memref<384x4xf32, #tpu.memory_space<vmem>>, vector<384x4xf32>
    tpu.vector_store %arg4[%c0_6, %c0_7], %7 {strides = array<i32>} : memref<384x4xf32, #tpu.memory_space<vmem>>, vector<384x4xf32>,
    return
  }
  func.func @transform_0(%arg0: i32) -> (i32, i32) {
    %c0_i32 = arith.constant 0 : i32
    %c0_i32_0 = arith.constant 0 : i32
    return %arg0, %c0_i32 : i32, i32
  }
  func.func @transform_1(%arg0: i32) -> (i32, i32) {
    %c0_i32 = arith.constant 0 : i32
    %c0_i32_0 = arith.constant 0 : i32
    %c0_i32_1 = arith.constant 0 : i32
    return %c0_i32, %c0_i32_0 : i32, i32
  }
  func.func @transform_2(%arg0: i32) -> (i32, i32) {
    %c0_i32 = arith.constant 0 : i32
    %c0_i32_0 = arith.constant 0 : i32
    %c0_i32_1 = arith.constant 0 : i32
    return %c0_i32, %c0_i32_0 : i32, i32
  }
  func.func @transform_3(%arg0: i32) -> (i32, i32) {
    %c0_i32 = arith.constant 0 : i32
    %c0_i32_0 = arith.constant 0 : i32
    return %arg0, %c0_i32 : i32, i32
  }
}

</mosaic_0001>

<bundles_post_ra>
// kernel: tile.8
= control target key start
LH: loop header
LB: loop body
LE: loop exit
PB: predicated region body
PF: predicated region fallthrough
CT: control target
= control target key end

     0   :  { %s22_s0 = inlined_call_operand.vmem [shape: f32[2], index: 0, kind: input, shape index: {}]   ;;  %s23_s1 = inlined_call_operand.vmem [shape: f32[4,2], index: 1, kind: output, shape index: {}]  }
   0x1   :  { %v4_v0 = vld [vmem:[%s22_s0] ss:$0 sm:$0xff] }
   0x2   :  { %5 = vst [vmem:[%s23_s1] sm:$0xf] %v4_v0 }

// kernel: tile.9
= control target key start
LH: loop header
LB: loop body
LE: loop exit
PB: predicated region body
PF: predicated region fallthrough
CT: control target
= control target key end

     0   :  { %vm7_vm0 = vcmask 15360   ;;  %s37_s8 = smov 2   ;;  %s38_s9 = smov 4   ;;  %vm13_vm1 = vcmask 64560   ;;  %vm19_vm2 = vcmask 48160   ;;  %vm25_vm3 = vcmask 31760   ;;  %s55_s0 = inlined_call_operand.vmem [shape: f32[4,2], index: 0, kind: input, shape index: {}]   ;;  %s56_s1 = inlined_call_operand.vmem [shape: f32[1,8], index: 1, kind: output, shape index: {}]  }
   0x1   :  { %v4_v0 = vld [vmem:[%s55_s0] sm:$0xf]  ;;  %s36_s0 = smov 6  }
   0x2   :  { %5 = vst [vmem:[#allocation1] sm:$0xf] %v4_v0 }
   0x9   :  { %v10_v1 = vld [vmem:[#allocation1 + $0x3] sm:$0x1]   ;;  %v22_v2 = vld [vmem:[#allocation1 + $0x1] sm:$0x1]   ;;  %v6_v3 = vld [vmem:[#allocation1] sm:$0x1]  }
   0xa   :  { %11 = vrot.lane.b32.xlu0 %v10_v1, %s36_s0  ;;  %23 = vrot.lane.b32.xlu1 %v22_v2, %s37_s8  ;;  %v16_v4 = vld [vmem:[#allocation1 + $0x2] sm:$0x1]   ;;  %8 = vst.msk [vmem:[#allocation0] sm:$0x1] %vm7_vm0, %v6_v3  }
   0xe   :  { %17 = vrot.lane.b32.xlu0 %v16_v4, %s38_s9 }
  0x7c   :  { %v12_v5 = vpop.permute.xlu0 %11   ;;  %v24_v6 = vpop.permute.xlu1 %23  }
  0x7d   :  { %14 = vst.msk [vmem:[#allocation0] sm:$0x1] %vm13_vm1, %v12_v5  }
  0x80   :  { %v18_v7 = vpop.permute.xlu0 %17  }
  0x81   :  { %20 = vst.msk [vmem:[#allocation0] sm:$0x1] %vm19_vm2, %v18_v7  }
  0x82   :  { %26 = vst.msk [vmem:[#allocation0] sm:$0x1] %vm25_vm3, %v24_v6  }
  0x89   :  { %v30_v8 = vld [vmem:[#allocation0] sm:$0x1] }
  0x8a   :  { %32 = vst [vmem:[%s56_s1] sm:$0x1] %v30_v8 }

// kernel: _lambda_.3
= control target key start
LH: loop header
LB: loop body
LE: loop exit
PB: predicated region body
PF: predicated region fallthrough
CT: control target
= control target key end

     0   :  { %vm104_vm0 = vcmask 1041408   ;;  %vm79_vm1 = vcmask 31744   ;;  %vm285_vm2 = vcmask 60416   ;;  %s534_s1 = inlined_call_operand.vmem [shape: bf16[4,8], index: 1, kind: input, shape index: {}]   ;;  %s535_s0 = inlined_call_operand.vmem [shape: bf16[128,4], index: 0, kind: input, shape index: {}]   ;;  %s536_s2 = inlined_call_operand.vmem [shape: f32[1,8], index: 2, kind: input, shape index: {}]   ;;  %s537_s3 = inlined_call_operand.vmem [shape: bf16[128,8], index: 3, kind: output, shape index: {}]  }
   0x1   :  { %v31_v0 = vld [vmem:[%s534_s1] sm:$0x3]  ;;  %v388_v4 = vld [vmem:[%s535_s0 + $0x8] sm:$0xff]   ;;  %v390_v6 = vld [vmem:[%s535_s0 + $0x10] sm:$0xff]  }
   0x2   :  { %384 = vmatprep.subr.msk.bf16.mxu0 %vm104_vm0, %v31_v0  ;;  %385 = vmatprep.subr.msk.bf16.mxu1 %vm104_vm0, %v31_v0  ;;  %v106_v1 = vsel %vm104_vm0, %v31_v0, 0  ;;  %v386_v2 = vld [vmem:[%s535_s0] sm:$0xff]   ;;  %v389_v5 = vld [vmem:[%s535_s0 + $0x28] sm:$0xff]   ;;  %v391_v7 = vld [vmem:[%s535_s0 + $0x30] sm:$0xff]  }
   0x3   :  { %365 = vmatpush3.bf16.msra.mxu0 %v106_v1  ;;  %383 = vmatpush3.bf16.msra.mxu1 %v106_v1  ;;  %v387_v3 = vld [vmem:[%s535_s0 + $0x20] sm:$0xff]   ;;  %v392_v8 = vld [vmem:[%s535_s0 + $0x18] sm:$0xff]  }
   0x4   :  { %366 = vmatprep.mubr.msk.bf16.mxu0 %vm79_vm1, %v386_v2  ;;  %374 = vmatprep.mubr.msk.bf16.mxu1 %vm79_vm1, %v387_v3  ;;  %v393_v9 = vld [vmem:[%s535_s0 + $0x38] sm:$0xff]   ;;  %v452_v10 = vld [vmem:[%s536_s2] ss:$0 sm:$0xff] }
   0x6   :  { %367 = vmatmul.mubr.msk.bf16.vlgmr.msra.gmra.mrb[0].mxu0 %vm79_vm1, %v388_v4  ;;  %375 = vmatmul.mubr.msk.bf16.vlgmr.msra.gmra.mrb[0].mxu1 %vm79_vm1, %v389_v5 }
   0x7   :  { %370 = vmatprep.mubr.msk.bf16.mxu0 %vm79_vm1, %v390_v6  ;;  %378 = vmatprep.mubr.msk.bf16.mxu1 %vm79_vm1, %v391_v7 }
   0xe   :  { %371 = vmatmul.mubr.msk.bf16.gmra.mrb[4].mxu0 %vm79_vm1, %v392_v8  ;;  %379 = vmatmul.mubr.msk.bf16.gmra.mrb[4].mxu1 %vm79_vm1, %v393_v9 }
  0xd9   :  { %v368_v11 = vpop.f32.mrb[0].mxu0  ;;  %v376_v13 = vpop.f32.mrb[0].mxu1 }
  0xda   :  { %v151_v12 = vadd.f32 %v368_v11, %v452_v10  ;;  %v142_v14 = vpop.f32.mrb[1].mxu0  ;;  %v183_v15 = vadd.f32 %v376_v13, %v452_v10  ;;  %v174_v17 = vpop.f32.mrb[1].mxu1 }
  0xdb   :  { %v143_v16 = vadd.f32 %v452_v10, %v142_v14  ;;  %v369_v18 = vpop.f32.mrb[2].mxu0  ;;  %v175_v20 = vadd.f32 %v452_v10, %v174_v17  ;;  %v377_v22 = vpop.f32.mrb[2].mxu1 }
  0xdc   :  { %v207_v19 = vmax.f32 %v151_v12, 0.0  ;;  %v154_v21 = vadd.f32 %v369_v18, %v452_v10  ;;  %v145_v23 = vpop.f32.mrb[3].mxu0  ;;  %v215_v24 = vmax.f32 %v183_v15, 0.0  ;;  %v186_v26 = vadd.f32 %v377_v22, %v452_v10  ;;  %v177_v28 = vpop.f32.mrb[3].mxu1 }
  0xdd   :  { %v205_v25 = vmax.f32 %v143_v16, 0.0  ;;  %v146_v27 = vadd.f32 %v452_v10, %v145_v23  ;;  %v213_v30 = vmax.f32 %v175_v20, 0.0  ;;  %v178_v32 = vadd.f32 %v452_v10, %v177_v28 }
  0xde   :  { %v341_v29 = vpack.c.bf16 %v207_v19, %v207_v19  ;;  %v208_v31 = vmax.f32 %v154_v21, 0.0  ;;  %v349_v33 = vpack.c.bf16 %v215_v24, %v215_v24  ;;  %v216_v35 = vmax.f32 %v186_v26, 0.0 }
  0xdf   :  { %v339_v34 = vpack.c.bf16 %v205_v25, %v205_v25  ;;  %v206_v36 = vmax.f32 %v146_v27, 0.0  ;;  %v347_v37 = vpack.c.bf16 %v213_v30, %v213_v30  ;;  %v214_v39 = vmax.f32 %v178_v32, 0.0 }
  0xe0   :  { %288 = vst.msk [vmem:[%s537_s3 + $0x8] sm:$0xf] %vm285_vm2, %v341_v29  ;;  %v342_v38 = vpack.c.bf16 %v208_v31, %v208_v31  ;;  %296 = vst.msk [vmem:[%s537_s3 + $0x28] sm:$0xf] %vm285_vm2, %v349_v33  ;;  %v350_v40 = vpack.c.bf16 %v216_v35, %v216_v35 }
  0xe1   :  { %286 = vst.msk [vmem:[%s537_s3] sm:$0xf] %vm285_vm2, %v339_v34  ;;  %v340_v41 = vpack.c.bf16 %v206_v36, %v206_v36  ;;  %v372_v42 = vpop.f32.mrb[4].mxu0  ;;  %294 = vst.msk [vmem:[%s537_s3 + $0x20] sm:$0xf] %vm285_vm2, %v347_v37  ;;  %v348_v43 = vpack.c.bf16 %v214_v39, %v214_v39  ;;  %v380_v45 = vpop.f32.mrb[4].mxu1 }
  0xe2   :  { %289 = vst.msk [vmem:[%s537_s3 + $0xc] sm:$0xf] %vm285_vm2, %v342_v38  ;;  %v167_v44 = vadd.f32 %v372_v42, %v452_v10  ;;  %v158_v46 = vpop.f32.mrb[5].mxu0  ;;  %297 = vst.msk [vmem:[%s537_s3 + $0x2c] sm:$0xf] %vm285_vm2, %v350_v40  ;;  %v199_v47 = vadd.f32 %v380_v45, %v452_v10  ;;  %v190_v49 = vpop.f32.mrb[5].mxu1 }
  0xe3   :  { %287 = vst.msk [vmem:[%s537_s3 + $0x4] sm:$0xf] %vm285_vm2, %v340_v41  ;;  %v159_v48 = vadd.f32 %v452_v10, %v158_v46  ;;  %v373_v50 = vpop.f32.mrb[6].mxu0  ;;  %295 = vst.msk [vmem:[%s537_s3 + $0x24] sm:$0xf] %vm285_vm2, %v348_v43  ;;  %v191_v52 = vadd.f32 %v452_v10, %v190_v49  ;;  %v381_v54 = vpop.f32.mrb[6].mxu1 }
  0xe4   :  { %v211_v51 = vmax.f32 %v167_v44, 0.0  ;;  %v170_v53 = vadd.f32 %v373_v50, %v452_v10  ;;  %v161_v55 = vpop.f32.mrb[7].mxu0  ;;  %v219_v56 = vmax.f32 %v199_v47, 0.0  ;;  %v202_v58 = vadd.f32 %v381_v54, %v452_v10  ;;  %v193_v60 = vpop.f32.mrb[7].mxu1 }
  0xe5   :  { %v209_v57 = vmax.f32 %v159_v48, 0.0  ;;  %v162_v59 = vadd.f32 %v452_v10, %v161_v55  ;;  %v217_v62 = vmax.f32 %v191_v52, 0.0  ;;  %v194_v0 = vadd.f32 %v452_v10, %v193_v60 }
  0xe6   :  { %v345_v61 = vpack.c.bf16 %v211_v51, %v211_v51  ;;  %v212_v63 = vmax.f32 %v170_v53, 0.0  ;;  %v353_v1 = vpack.c.bf16 %v219_v56, %v219_v56  ;;  %v220_v3 = vmax.f32 %v202_v58, 0.0 }
  0xe7   :  { %v343_v2 = vpack.c.bf16 %v209_v57, %v209_v57  ;;  %v210_v4 = vmax.f32 %v162_v59, 0.0  ;;  %v351_v5 = vpack.c.bf16 %v217_v62, %v217_v62  ;;  %v218_v7 = vmax.f32 %v194_v0, 0.0 }
  0xe8   :  { %292 = vst.msk [vmem:[%s537_s3 + $0x18] sm:$0xf] %vm285_vm2, %v345_v61  ;;  %v346_v6 = vpack.c.bf16 %v212_v63, %v212_v63  ;;  %300 = vst.msk [vmem:[%s537_s3 + $0x38] sm:$0xf] %vm285_vm2, %v353_v1  ;;  %v354_v8 = vpack.c.bf16 %v220_v3, %v220_v3 }
  0xe9   :  { %290 = vst.msk [vmem:[%s537_s3 + $0x10] sm:$0xf] %vm285_vm2, %v343_v2  ;;  %v344_v9 = vpack.c.bf16 %v210_v4, %v210_v4  ;;  %298 = vst.msk [vmem:[%s537_s3 + $0x30] sm:$0xf] %vm285_vm2, %v351_v5  ;;  %v352_v10 = vpack.c.bf16 %v218_v7, %v218_v7 }
  0xea   :  { %293 = vst.msk [vmem:[%s537_s3 + $0x1c] sm:$0xf] %vm285_vm2, %v346_v6  ;;  %301 = vst.msk [vmem:[%s537_s3 + $0x3c] sm:$0xf] %vm285_vm2, %v354_v8 }
  0xeb   :  { %291 = vst.msk [vmem:[%s537_s3 + $0x14] sm:$0xf] %vm285_vm2, %v344_v9  ;;  %299 = vst.msk [vmem:[%s537_s3 + $0x34] sm:$0xf] %vm285_vm2, %v352_v10 }

// kernel: _lambda_.4
= control target key start
LH: loop header
LB: loop body
LE: loop exit
PB: predicated region body
PF: predicated region fallthrough
CT: control target
= control target key end

     0   :  { %vm421_vm0 = vcmask 1040384   ;;  %vm324_vm1 = vcmask 146432   ;;  %vm1662_vm2 = vcmask 27648   ;;  %s2953_s3 = inlined_call_operand.vmem [shape: bf16[18,4], index: 3, kind: input, shape index: {}]   ;;  %s2954_s1 = inlined_call_operand.vmem [shape: bf16[18,4], index: 1, kind: input, shape index: {}]   ;;  %s2955_s2 = inlined_call_operand.vmem [shape: bf16[512,18], index: 2, kind: input, shape index: {}]   ;;  %s2956_s0 = inlined_call_operand.vmem [shape: bf16[512,18], index: 0, kind: input, shape index: {}]   ;;  %s2957_s4 = inlined_call_operand.vmem [shape: f32[1,4], index: 4, kind: input, shape index: {}]   ;;  %s2958_s5 = inlined_call_operand.vmem [shape: bf16[512,4], index: 5, kind: output, shape index: {}]  }
   0x1   :  { %v2262_v0 = vld [vmem:[%s2953_s3] sm:$0xff]   ;;  %v2263_v1 = vld [vmem:[%s2953_s3 + $0x8] ss:$0 sps:$4 sm:$0x11]   ;;  %v2270_v10 = vld [vmem:[%s2955_s2 + $0x10] sm:$0xff]  }
   0x2   :  { %v2264_v2 = vld [vmem:[%s2954_s1] sm:$0xff]   ;;  %2060 = vmatprep.subr.bf16.mxu1 %v2262_v0  ;;  %v2265_v3 = vld [vmem:[%s2954_s1 + $0x8] ss:$0 sps:$4 sm:$0x11]   ;;  %v423_v5 = vsel %vm421_vm0, %v2263_v1, 0  ;;  %v2271_v11 = vld [vmem:[%s2956_s0 + $0x10] sm:$0xff]  }
   0x3   :  { %2128 = vmatprep.subr.bf16.mxu0 %v2264_v2  ;;  %2061 = vmatpush3.bf16.msra.mxu1 %v2262_v0  ;;  %v2266_v4 = vld [vmem:[%s2955_s2] sm:$0xff]   ;;  %v980_v7 = vsel %vm421_vm0, %v2265_v3, 0  ;;  %v2268_v8 = vld [vmem:[%s2955_s2 + $0x8] sm:$0xff]   ;;  %v2272_v12 = vld [vmem:[%s2955_s2 + $0x18] sm:$0xff]  }
   0x4   :  { %2129 = vmatpush3.bf16.msra.mxu0 %v2264_v2  ;;  %2260 = vmatprep.subr.msk.bf16.mxu1 %vm421_vm0, %v2263_v1  ;;  %v2267_v6 = vld [vmem:[%s2956_s0] sm:$0xff]   ;;  %v2269_v9 = vld [vmem:[%s2956_s0 + $0x8] sm:$0xff]   ;;  %v2273_v13 = vld [vmem:[%s2956_s0 + $0x18] sm:$0xff]  }
   0x5   :  { %2261 = vmatprep.subr.msk.bf16.mxu0 %vm421_vm0, %v2265_v3  ;;  %2064 = vmatprep.mubr.msk.bf16.mxu1 %vm324_vm1, %v2266_v4  ;;  %v2274_v14 = vld [vmem:[%s2955_s2 + $0x20] sm:$0xff]   ;;  %v2276_v16 = vld [vmem:[%s2955_s2 + $0x28] sm:$0xff]   ;;  %v2278_v18 = vld [vmem:[%s2955_s2 + $0x30] sm:$0xff]  }
   0x6   :  { %2132 = vmatprep.mubr.msk.bf16.mxu0 %vm324_vm1, %v2267_v6  ;;  %v2275_v15 = vld [vmem:[%s2956_s0 + $0x20] sm:$0xff]   ;;  %v2277_v17 = vld [vmem:[%s2956_s0 + $0x28] sm:$0xff]   ;;  %v2279_v19 = vld [vmem:[%s2956_s0 + $0x30] sm:$0xff]  }
   0x7   :  { %2063 = vmatpush3.bf16.msra.mxu1 %v423_v5  ;;  %v2280_v20 = vld [vmem:[%s2955_s2 + $0x38] sm:$0xff]   ;;  %v2282_v22 = vld [vmem:[%s2955_s2 + $0x40] sm:$0xff]   ;;  %v2284_v24 = vld [vmem:[%s2955_s2 + $0x48] sm:$0xff]  }
   0x8   :  { %2131 = vmatpush3.bf16.msra.mxu0 %v980_v7  ;;  %v2281_v21 = vld [vmem:[%s2956_s0 + $0x38] sm:$0xff]   ;;  %v2283_v23 = vld [vmem:[%s2956_s0 + $0x40] sm:$0xff]   ;;  %v2285_v25 = vld [vmem:[%s2956_s0 + $0x48] sm:$0xff]  }
   0x9   :  { %v2286_v26 = vld [vmem:[%s2955_s2 + $0x50] sm:$0xff]   ;;  %v2288_v28 = vld [vmem:[%s2955_s2 + $0x58] sm:$0xff]   ;;  %v2290_v30 = vld [vmem:[%s2955_s2 + $0x60] sm:$0xff]  }
   0xa   :  { %2065 = vmatmul.mubr.msk.bf16.vlgmr.msra.gmra.mrb[0].mxu1 %vm324_vm1, %v2268_v8  ;;  %v2287_v27 = vld [vmem:[%s2956_s0 + $0x50] sm:$0xff]   ;;  %v2289_v29 = vld [vmem:[%s2956_s0 + $0x58] sm:$0xff]   ;;  %v2291_v31 = vld [vmem:[%s2956_s0 + $0x60] sm:$0xff]  }
   0xb   :  { %2133 = vmatmul.mubr.msk.bf16.vlgmr.msra.gmra.mrb[0].mxu0 %vm324_vm1, %v2269_v9  ;;  %2068 = vmatprep.mubr.msk.bf16.mxu1 %vm324_vm1, %v2270_v10  ;;  %v2292_v32 = vld [vmem:[%s2955_s2 + $0x68] sm:$0xff]   ;;  %v2294_v34 = vld [vmem:[%s2955_s2 + $0x70] sm:$0xff]   ;;  %v2296_v36 = vld [vmem:[%s2955_s2 + $0x78] sm:$0xff]  }
   0xc   :  { %2136 = vmatprep.mubr.msk.bf16.mxu0 %vm324_vm1, %v2271_v11  ;;  %v2293_v33 = vld [vmem:[%s2956_s0 + $0x68] sm:$0xff]   ;;  %v2295_v35 = vld [vmem:[%s2956_s0 + $0x70] sm:$0xff]   ;;  %v2297_v37 = vld [vmem:[%s2956_s0 + $0x78] sm:$0xff]  }
   0xd   :  { %v2298_v38 = vld [vmem:[%s2955_s2 + $0x80] sm:$0xff]   ;;  %v2300_v40 = vld [vmem:[%s2955_s2 + $0x88] sm:$0xff]   ;;  %v2302_v42 = vld [vmem:[%s2955_s2 + $0x90] sm:$0xff]  }
   0xe   :  { %v2299_v39 = vld [vmem:[%s2956_s0 + $0x80] sm:$0xff]   ;;  %v2301_v41 = vld [vmem:[%s2956_s0 + $0x88] sm:$0xff]   ;;  %v2303_v43 = vld [vmem:[%s2956_s0 + $0x90] sm:$0xff]  }
   0xf   :  { %v2304_v44 = vld [vmem:[%s2955_s2 + $0x98] sm:$0xff]   ;;  %v2306_v46 = vld [vmem:[%s2955_s2 + $0xa0] sm:$0xff]   ;;  %v2308_v48 = vld [vmem:[%s2955_s2 + $0xa8] sm:$0xff]  }
  0x10   :  { %v2305_v45 = vld [vmem:[%s2956_s0 + $0x98] sm:$0xff]   ;;  %v2307_v47 = vld [vmem:[%s2956_s0 + $0xa0] sm:$0xff]   ;;  %v2309_v49 = vld [vmem:[%s2956_s0 + $0xa8] sm:$0xff]  }
  0x11   :  { %v2310_v50 = vld [vmem:[%s2955_s2 + $0xb0] sm:$0xff]   ;;  %v2312_v52 = vld [vmem:[%s2955_s2 + $0xb8] sm:$0xff]   ;;  %v2314_v54 = vld [vmem:[%s2955_s2 + $0xc0] sm:$0xff]  }
  0x12   :  { %2069 = vmatmul.mubr.msk.bf16.gmra.mrb[4].mxu1 %vm324_vm1, %v2272_v12  ;;  %v2311_v51 = vld [vmem:[%s2956_s0 + $0xb0] sm:$0xff]   ;;  %v2313_v53 = vld [vmem:[%s2956_s0 + $0xb8] sm:$0xff]   ;;  %v2315_v55 = vld [vmem:[%s2956_s0 + $0xc0] sm:$0xff]  }
  0x13   :  { %2137 = vmatmul.mubr.msk.bf16.gmra.mrb[4].mxu0 %vm324_vm1, %v2273_v13  ;;  %2072 = vmatprep.mubr.msk.bf16.mxu1 %vm324_vm1, %v2274_v14  ;;  %v2316_v56 = vld [vmem:[%s2955_s2 + $0xc8] sm:$0xff]   ;;  %v2318_v58 = vld [vmem:[%s2955_s2 + $0xd0] sm:$0xff]   ;;  %v2320_v60 = vld [vmem:[%s2955_s2 + $0xd8] sm:$0xff]  }
  0x14   :  { %2140 = vmatprep.mubr.msk.bf16.mxu0 %vm324_vm1, %v2275_v15  ;;  %v2317_v57 = vld [vmem:[%s2956_s0 + $0xc8] sm:$0xff]   ;;  %v2319_v59 = vld [vmem:[%s2956_s0 + $0xd0] sm:$0xff]   ;;  %v2321_v61 = vld [vmem:[%s2956_s0 + $0xd8] sm:$0xff]  }
  0x15   :  { %v2322_v62 = vld [vmem:[%s2955_s2 + $0xe0] sm:$0xff]   ;;  %v2324_v0 = vld [vmem:[%s2955_s2 + $0xe8] sm:$0xff]   ;;  %v2326_v2 = vld [vmem:[%s2955_s2 + $0xf0] sm:$0xff]  }
  0x16   :  { %v2323_v63 = vld [vmem:[%s2956_s0 + $0xe0] sm:$0xff]   ;;  %v2325_v1 = vld [vmem:[%s2956_s0 + $0xe8] sm:$0xff]   ;;  %v2327_v3 = vld [vmem:[%s2956_s0 + $0xf0] sm:$0xff]  }
  0x17   :  { %v2328_v4 = vld [vmem:[%s2955_s2 + $0xf8] sm:$0xff]   ;;  %v2631_v8 = vld [vmem:[%s2957_s4] ss:$0 sm:$0xff] }
  0x18   :  { %v2329_v5 = vld [vmem:[%s2956_s0 + $0xf8] sm:$0xff]  }
  0x1a   :  { %2073 = vmatmul.mubr.msk.bf16.gmra.mrb[8].mxu1 %vm324_vm1, %v2276_v16 }
  0x1b   :  { %2141 = vmatmul.mubr.msk.bf16.gmra.mrb[8].mxu0 %vm324_vm1, %v2277_v17  ;;  %2076 = vmatprep.mubr.msk.bf16.mxu1 %vm324_vm1, %v2278_v18 }
  0x1c   :  { %2144 = vmatprep.mubr.msk.bf16.mxu0 %vm324_vm1, %v2279_v19 }
  0x22   :  { %2077 = vmatmul.mubr.msk.bf16.gmra.mrb[12].mxu1 %vm324_vm1, %v2280_v20 }
  0x23   :  { %2145 = vmatmul.mubr.msk.bf16.gmra.mrb[12].mxu0 %vm324_vm1, %v2281_v21  ;;  %2080 = vmatprep.mubr.msk.bf16.mxu1 %vm324_vm1, %v2282_v22 }
  0x24   :  { %2148 = vmatprep.mubr.msk.bf16.mxu0 %vm324_vm1, %v2283_v23 }
  0x2a   :  { %2081 = vmatmul.mubr.msk.bf16.gmra.mrb[16].mxu1 %vm324_vm1, %v2284_v24 }
  0x2b   :  { %2149 = vmatmul.mubr.msk.bf16.gmra.mrb[16].mxu0 %vm324_vm1, %v2285_v25  ;;  %2084 = vmatprep.mubr.msk.bf16.mxu1 %vm324_vm1, %v2286_v26 }
  0x2c   :  { %2152 = vmatprep.mubr.msk.bf16.mxu0 %vm324_vm1, %v2287_v27 }
  0x32   :  { %2085 = vmatmul.mubr.msk.bf16.gmra.mrb[20].mxu1 %vm324_vm1, %v2288_v28 }
  0x33   :  { %2153 = vmatmul.mubr.msk.bf16.gmra.mrb[20].mxu0 %vm324_vm1, %v2289_v29  ;;  %2088 = vmatprep.mubr.msk.bf16.mxu1 %vm324_vm1, %v2290_v30 }
  0x34   :  { %2156 = vmatprep.mubr.msk.bf16.mxu0 %vm324_vm1, %v2291_v31 }
  0x3a   :  { %2089 = vmatmul.mubr.msk.bf16.gmra.mrb[24].mxu1 %vm324_vm1, %v2292_v32 }
  0x3b   :  { %2157 = vmatmul.mubr.msk.bf16.gmra.mrb[24].mxu0 %vm324_vm1, %v2293_v33  ;;  %2092 = vmatprep.mubr.msk.bf16.mxu1 %vm324_vm1, %v2294_v34 }
  0x3c   :  { %2160 = vmatprep.mubr.msk.bf16.mxu0 %vm324_vm1, %v2295_v35 }
  0x42   :  { %2093 = vmatmul.mubr.msk.bf16.gmra.mrb[28].mxu1 %vm324_vm1, %v2296_v36 }
  0x43   :  { %2161 = vmatmul.mubr.msk.bf16.gmra.mrb[28].mxu0 %vm324_vm1, %v2297_v37  ;;  %2096 = vmatprep.mubr.msk.bf16.mxu1 %vm324_vm1, %v2298_v38 }
  0x44   :  { %2164 = vmatprep.mubr.msk.bf16.mxu0 %vm324_vm1, %v2299_v39 }
  0x4a   :  { %2097 = vmatmul.mubr.msk.bf16.gmra.mrb[32].mxu1 %vm324_vm1, %v2300_v40 }
  0x4b   :  { %2165 = vmatmul.mubr.msk.bf16.gmra.mrb[32].mxu0 %vm324_vm1, %v2301_v41  ;;  %2100 = vmatprep.mubr.msk.bf16.mxu1 %vm324_vm1, %v2302_v42 }
  0x4c   :  { %2168 = vmatprep.mubr.msk.bf16.mxu0 %vm324_vm1, %v2303_v43 }
  0x52   :  { %2101 = vmatmul.mubr.msk.bf16.gmra.mrb[36].mxu1 %vm324_vm1, %v2304_v44 }
  0x53   :  { %2169 = vmatmul.mubr.msk.bf16.gmra.mrb[36].mxu0 %vm324_vm1, %v2305_v45  ;;  %2104 = vmatprep.mubr.msk.bf16.mxu1 %vm324_vm1, %v2306_v46 }
  0x54   :  { %2172 = vmatprep.mubr.msk.bf16.mxu0 %vm324_vm1, %v2307_v47 }
  0x5a   :  { %2105 = vmatmul.mubr.msk.bf16.gmra.mrb[40].mxu1 %vm324_vm1, %v2308_v48 }
  0x5b   :  { %2173 = vmatmul.mubr.msk.bf16.gmra.mrb[40].mxu0 %vm324_vm1, %v2309_v49  ;;  %2108 = vmatprep.mubr.msk.bf16.mxu1 %vm324_vm1, %v2310_v50 }
  0x5c   :  { %2176 = vmatprep.mubr.msk.bf16.mxu0 %vm324_vm1, %v2311_v51 }
  0x62   :  { %2109 = vmatmul.mubr.msk.bf16.gmra.mrb[44].mxu1 %vm324_vm1, %v2312_v52 }
  0x63   :  { %2177 = vmatmul.mubr.msk.bf16.gmra.mrb[44].mxu0 %vm324_vm1, %v2313_v53  ;;  %2112 = vmatprep.mubr.msk.bf16.mxu1 %vm324_vm1, %v2314_v54 }
  0x64   :  { %2180 = vmatprep.mubr.msk.bf16.mxu0 %vm324_vm1, %v2315_v55 }
  0x6a   :  { %2113 = vmatmul.mubr.msk.bf16.gmra.mrb[48].mxu1 %vm324_vm1, %v2316_v56 }
  0x6b   :  { %2181 = vmatmul.mubr.msk.bf16.gmra.mrb[48].mxu0 %vm324_vm1, %v2317_v57  ;;  %2116 = vmatprep.mubr.msk.bf16.mxu1 %vm324_vm1, %v2318_v58 }
  0x6c   :  { %2184 = vmatprep.mubr.msk.bf16.mxu0 %vm324_vm1, %v2319_v59 }
  0x72   :  { %2117 = vmatmul.mubr.msk.bf16.gmra.mrb[52].mxu1 %vm324_vm1, %v2320_v60 }
  0x73   :  { %2185 = vmatmul.mubr.msk.bf16.gmra.mrb[52].mxu0 %vm324_vm1, %v2321_v61  ;;  %2120 = vmatprep.mubr.msk.bf16.mxu1 %vm324_vm1, %v2322_v62 }
  0x74   :  { %2188 = vmatprep.mubr.msk.bf16.mxu0 %vm324_vm1, %v2323_v63 }
  0x7a   :  { %2121 = vmatmul.mubr.msk.bf16.gmra.mrb[56].mxu1 %vm324_vm1, %v2324_v0 }
  0x7b   :  { %2189 = vmatmul.mubr.msk.bf16.gmra.mrb[56].mxu0 %vm324_vm1, %v2325_v1  ;;  %2124 = vmatprep.mubr.msk.bf16.mxu1 %vm324_vm1, %v2326_v2 }
  0x7c   :  { %2192 = vmatprep.mubr.msk.bf16.mxu0 %vm324_vm1, %v2327_v3 }
  0x82   :  { %2125 = vmatmul.mubr.msk.bf16.gmra.mrb[60].mxu1 %vm324_vm1, %v2328_v4 }
  0x83   :  { %2193 = vmatmul.mubr.msk.bf16.gmra.mrb[60].mxu0 %vm324_vm1, %v2329_v5 }
  0xdd   :  { %v2066_v6 = vpop.f32.mrb[0].mxu1 }
  0xde   :  { %v2134_v7 = vpop.f32.mrb[0].mxu0  ;;  %v459_v9 = vpop.f32.mrb[1].mxu1 }
  0xdf   :  { %v1025_v10 = vadd.f32 %v2134_v7, %v2066_v6  ;;  %v1016_v11 = vpop.f32.mrb[1].mxu0  ;;  %v2067_v12 = vpop.f32.mrb[2].mxu1 }
  0xe0   :  { %v1017_v13 = vadd.f32 %v1016_v11, %v459_v9  ;;  %v2135_v14 = vpop.f32.mrb[2].mxu0  ;;  %v462_v15 = vpop.f32.mrb[3].mxu1 }
  0xe1   :  { %v1280_v16 = vadd.f32 %v2631_v8, %v1025_v10  ;;  %v1028_v17 = vadd.f32 %v2135_v14, %v2067_v12  ;;  %v1019_v18 = vpop.f32.mrb[3].mxu0 }
  0xe2   :  { %v1278_v19 = vadd.f32 %v2631_v8, %v1017_v13  ;;  %v1020_v20 = vadd.f32 %v1019_v18, %v462_v15 }
  0xe3   :  { %v1344_v21 = vmax.f32 %v1280_v16, 0.0  ;;  %v1281_v22 = vadd.f32 %v2631_v8, %v1028_v17 }
  0xe4   :  { %v1342_v23 = vmax.f32 %v1278_v19, 0.0  ;;  %v1279_v24 = vadd.f32 %v2631_v8, %v1020_v20 }
  0xe5   :  { %v1930_v25 = vpack.c.bf16 %v1344_v21, %v1344_v21  ;;  %v1345_v26 = vmax.f32 %v1281_v22, 0.0  ;;  %v2070_v27 = vpop.f32.mrb[4].mxu1 }
  0xe6   :  { %v1928_v28 = vpack.c.bf16 %v1342_v23, %v1342_v23  ;;  %v1343_v29 = vmax.f32 %v1279_v24, 0.0  ;;  %v2138_v30 = vpop.f32.mrb[4].mxu0  ;;  %v475_v31 = vpop.f32.mrb[5].mxu1 }
  0xe7   :  { %1665 = vst.msk [vmem:[%s2958_s5 + $0x8] sm:$0xf] %vm1662_vm2, %v1930_v25  ;;  %v1931_v32 = vpack.c.bf16 %v1345_v26, %v1345_v26  ;;  %v1041_v33 = vadd.f32 %v2138_v30, %v2070_v27  ;;  %v1032_v34 = vpop.f32.mrb[5].mxu0  ;;  %v2071_v35 = vpop.f32.mrb[6].mxu1 }
  0xe8   :  { %1663 = vst.msk [vmem:[%s2958_s5] sm:$0xf] %vm1662_vm2, %v1928_v28  ;;  %v1929_v36 = vpack.c.bf16 %v1343_v29, %v1343_v29  ;;  %v1033_v37 = vadd.f32 %v1032_v34, %v475_v31  ;;  %v2139_v38 = vpop.f32.mrb[6].mxu0  ;;  %v478_v39 = vpop.f32.mrb[7].mxu1 }
  0xe9   :  { %1666 = vst.msk [vmem:[%s2958_s5 + $0xc] sm:$0xf] %vm1662_vm2, %v1931_v32  ;;  %v1284_v40 = vadd.f32 %v2631_v8, %v1041_v33  ;;  %v1044_v41 = vadd.f32 %v2139_v38, %v2071_v35  ;;  %v1035_v42 = vpop.f32.mrb[7].mxu0 }
  0xea   :  { %1664 = vst.msk [vmem:[%s2958_s5 + $0x4] sm:$0xf] %vm1662_vm2, %v1929_v36  ;;  %v1282_v43 = vadd.f32 %v2631_v8, %v1033_v37  ;;  %v1036_v44 = vadd.f32 %v1035_v42, %v478_v39 }
  0xeb   :  { %v1348_v45 = vmax.f32 %v1284_v40, 0.0  ;;  %v1285_v46 = vadd.f32 %v2631_v8, %v1044_v41 }
  0xec   :  { %v1346_v47 = vmax.f32 %v1282_v43, 0.0  ;;  %v1283_v48 = vadd.f32 %v2631_v8, %v1036_v44 }
  0xed   :  { %v1934_v49 = vpack.c.bf16 %v1348_v45, %v1348_v45  ;;  %v1349_v50 = vmax.f32 %v1285_v46, 0.0  ;;  %v2074_v51 = vpop.f32.mrb[8].mxu1 }
  0xee   :  { %v1932_v52 = vpack.c.bf16 %v1346_v47, %v1346_v47  ;;  %v1347_v53 = vmax.f32 %v1283_v48, 0.0  ;;  %v2142_v54 = vpop.f32.mrb[8].mxu0  ;;  %v491_v55 = vpop.f32.mrb[9].mxu1 }
  0xef   :  { %1669 = vst.msk [vmem:[%s2958_s5 + $0x18] sm:$0xf] %vm1662_vm2, %v1934_v49  ;;  %v1935_v56 = vpack.c.bf16 %v1349_v50, %v1349_v50  ;;  %v1057_v57 = vadd.f32 %v2142_v54, %v2074_v51  ;;  %v1048_v58 = vpop.f32.mrb[9].mxu0  ;;  %v2075_v59 = vpop.f32.mrb[10].mxu1 }
  0xf0   :  { %1667 = vst.msk [vmem:[%s2958_s5 + $0x10] sm:$0xf] %vm1662_vm2, %v1932_v52  ;;  %v1933_v60 = vpack.c.bf16 %v1347_v53, %v1347_v53  ;;  %v1049_v61 = vadd.f32 %v1048_v58, %v491_v55  ;;  %v2143_v62 = vpop.f32.mrb[10].mxu0  ;;  %v494_v63 = vpop.f32.mrb[11].mxu1 }
  0xf1   :  { %1670 = vst.msk [vmem:[%s2958_s5 + $0x1c] sm:$0xf] %vm1662_vm2, %v1935_v56  ;;  %v1288_v0 = vadd.f32 %v2631_v8, %v1057_v57  ;;  %v1060_v1 = vadd.f32 %v2143_v62, %v2075_v59  ;;  %v1051_v2 = vpop.f32.mrb[11].mxu0 }
  0xf2   :  { %1668 = vst.msk [vmem:[%s2958_s5 + $0x14] sm:$0xf] %vm1662_vm2, %v1933_v60  ;;  %v1286_v3 = vadd.f32 %v2631_v8, %v1049_v61  ;;  %v1052_v4 = vadd.f32 %v1051_v2, %v494_v63 }
  0xf3   :  { %v1352_v5 = vmax.f32 %v1288_v0, 0.0  ;;  %v1289_v6 = vadd.f32 %v2631_v8, %v1060_v1 }
  0xf4   :  { %v1350_v7 = vmax.f32 %v1286_v3, 0.0  ;;  %v1287_v9 = vadd.f32 %v2631_v8, %v1052_v4 }
  0xf5   :  { %v1938_v10 = vpack.c.bf16 %v1352_v5, %v1352_v5  ;;  %v1353_v11 = vmax.f32 %v1289_v6, 0.0  ;;  %v2078_v12 = vpop.f32.mrb[12].mxu1 }
  0xf6   :  { %v1936_v13 = vpack.c.bf16 %v1350_v7, %v1350_v7  ;;  %v1351_v14 = vmax.f32 %v1287_v9, 0.0  ;;  %v2146_v15 = vpop.f32.mrb[12].mxu0  ;;  %v507_v16 = vpop.f32.mrb[13].mxu1 }
  0xf7   :  { %1673 = vst.msk [vmem:[%s2958_s5 + $0x28] sm:$0xf] %vm1662_vm2, %v1938_v10  ;;  %v1939_v17 = vpack.c.bf16 %v1353_v11, %v1353_v11  ;;  %v1073_v18 = vadd.f32 %v2146_v15, %v2078_v12  ;;  %v1064_v19 = vpop.f32.mrb[13].mxu0  ;;  %v2079_v20 = vpop.f32.mrb[14].mxu1 }
  0xf8   :  { %1671 = vst.msk [vmem:[%s2958_s5 + $0x20] sm:$0xf] %vm1662_vm2, %v1936_v13  ;;  %v1937_v21 = vpack.c.bf16 %v1351_v14, %v1351_v14  ;;  %v1065_v22 = vadd.f32 %v1064_v19, %v507_v16  ;;  %v2147_v23 = vpop.f32.mrb[14].mxu0  ;;  %v510_v24 = vpop.f32.mrb[15].mxu1 }
  0xf9   :  { %1674 = vst.msk [vmem:[%s2958_s5 + $0x2c] sm:$0xf] %vm1662_vm2, %v1939_v17  ;;  %v1292_v25 = vadd.f32 %v2631_v8, %v1073_v18  ;;  %v1076_v26 = vadd.f32 %v2147_v23, %v2079_v20  ;;  %v1067_v27 = vpop.f32.mrb[15].mxu0 }
  0xfa   :  { %1672 = vst.msk [vmem:[%s2958_s5 + $0x24] sm:$0xf] %vm1662_vm2, %v1937_v21  ;;  %v1290_v28 = vadd.f32 %v2631_v8, %v1065_v22  ;;  %v1068_v29 = vadd.f32 %v1067_v27, %v510_v24 }
  0xfb   :  { %v1356_v30 = vmax.f32 %v1292_v25, 0.0  ;;  %v1293_v31 = vadd.f32 %v2631_v8, %v1076_v26 }
  0xfc   :  { %v1354_v32 = vmax.f32 %v1290_v28, 0.0  ;;  %v1291_v33 = vadd.f32 %v2631_v8, %v1068_v29 }
  0xfd   :  { %v1942_v34 = vpack.c.bf16 %v1356_v30, %v1356_v30  ;;  %v1357_v35 = vmax.f32 %v1293_v31, 0.0  ;;  %v2082_v36 = vpop.f32.mrb[16].mxu1 }
  0xfe   :  { %v1940_v37 = vpack.c.bf16 %v1354_v32, %v1354_v32  ;;  %v1355_v38 = vmax.f32 %v1291_v33, 0.0  ;;  %v2150_v39 = vpop.f32.mrb[16].mxu0  ;;  %v523_v40 = vpop.f32.mrb[17].mxu1 }
  0xff   :  { %1677 = vst.msk [vmem:[%s2958_s5 + $0x38] sm:$0xf] %vm1662_vm2, %v1942_v34  ;;  %v1943_v41 = vpack.c.bf16 %v1357_v35, %v1357_v35  ;;  %v1089_v42 = vadd.f32 %v2150_v39, %v2082_v36  ;;  %v1080_v43 = vpop.f32.mrb[17].mxu0  ;;  %v2083_v44 = vpop.f32.mrb[18].mxu1 }
 0x100   :  { %1675 = vst.msk [vmem:[%s2958_s5 + $0x30] sm:$0xf] %vm1662_vm2, %v1940_v37  ;;  %v1941_v45 = vpack.c.bf16 %v1355_v38, %v1355_v38  ;;  %v1081_v46 = vadd.f32 %v1080_v43, %v523_v40  ;;  %v2151_v47 = vpop.f32.mrb[18].mxu0  ;;  %v526_v48 = vpop.f32.mrb[19].mxu1 }
 0x101   :  { %1678 = vst.msk [vmem:[%s2958_s5 + $0x3c] sm:$0xf] %vm1662_vm2, %v1943_v41  ;;  %v1296_v49 = vadd.f32 %v2631_v8, %v1089_v42  ;;  %v1092_v50 = vadd.f32 %v2151_v47, %v2083_v44  ;;  %v1083_v51 = vpop.f32.mrb[19].mxu0 }
 0x102   :  { %1676 = vst.msk [vmem:[%s2958_s5 + $0x34] sm:$0xf] %vm1662_vm2, %v1941_v45  ;;  %v1294_v52 = vadd.f32 %v2631_v8, %v1081_v46  ;;  %v1084_v53 = vadd.f32 %v1083_v51, %v526_v48 }
 0x103   :  { %v1360_v54 = vmax.f32 %v1296_v49, 0.0  ;;  %v1297_v55 = vadd.f32 %v2631_v8, %v1092_v50 }
 0x104   :  { %v1358_v56 = vmax.f32 %v1294_v52, 0.0  ;;  %v1295_v57 = vadd.f32 %v2631_v8, %v1084_v53 }
 0x105   :  { %v1946_v58 = vpack.c.bf16 %v1360_v54, %v1360_v54  ;;  %v1361_v59 = vmax.f32 %v1297_v55, 0.0  ;;  %v2086_v60 = vpop.f32.mrb[20].mxu1 }
 0x106   :  { %v1944_v61 = vpack.c.bf16 %v1358_v56, %v1358_v56  ;;  %v1359_v62 = vmax.f32 %v1295_v57, 0.0  ;;  %v2154_v63 = vpop.f32.mrb[20].mxu0  ;;  %v539_v0 = vpop.f32.mrb[21].mxu1 }
 0x107   :  { %1681 = vst.msk [vmem:[%s2958_s5 + $0x48] sm:$0xf] %vm1662_vm2, %v1946_v58  ;;  %v1947_v1 = vpack.c.bf16 %v1361_v59, %v1361_v59  ;;  %v1105_v2 = vadd.f32 %v2154_v63, %v2086_v60  ;;  %v1096_v3 = vpop.f32.mrb[21].mxu0  ;;  %v2087_v4 = vpop.f32.mrb[22].mxu1 }
 0x108   :  { %1679 = vst.msk [vmem:[%s2958_s5 + $0x40] sm:$0xf] %vm1662_vm2, %v1944_v61  ;;  %v1945_v5 = vpack.c.bf16 %v1359_v62, %v1359_v62  ;;  %v1097_v6 = vadd.f32 %v1096_v3, %v539_v0  ;;  %v2155_v7 = vpop.f32.mrb[22].mxu0  ;;  %v542_v9 = vpop.f32.mrb[23].mxu1 }
 0x109   :  { %1682 = vst.msk [vmem:[%s2958_s5 + $0x4c] sm:$0xf] %vm1662_vm2, %v1947_v1  ;;  %v1300_v10 = vadd.f32 %v2631_v8, %v1105_v2  ;;  %v1108_v11 = vadd.f32 %v2155_v7, %v2087_v4  ;;  %v1099_v12 = vpop.f32.mrb[23].mxu0 }
 0x10a   :  { %1680 = vst.msk [vmem:[%s2958_s5 + $0x44] sm:$0xf] %vm1662_vm2, %v1945_v5  ;;  %v1298_v13 = vadd.f32 %v2631_v8, %v1097_v6  ;;  %v1100_v14 = vadd.f32 %v1099_v12, %v542_v9 }
 0x10b   :  { %v1364_v15 = vmax.f32 %v1300_v10, 0.0  ;;  %v1301_v16 = vadd.f32 %v2631_v8, %v1108_v11 }
 0x10c   :  { %v1362_v17 = vmax.f32 %v1298_v13, 0.0  ;;  %v1299_v18 = vadd.f32 %v2631_v8, %v1100_v14 }
 0x10d   :  { %v1950_v19 = vpack.c.bf16 %v1364_v15, %v1364_v15  ;;  %v1365_v20 = vmax.f32 %v1301_v16, 0.0  ;;  %v2090_v21 = vpop.f32.mrb[24].mxu1 }
 0x10e   :  { %v1948_v22 = vpack.c.bf16 %v1362_v17, %v1362_v17  ;;  %v1363_v23 = vmax.f32 %v1299_v18, 0.0  ;;  %v2158_v24 = vpop.f32.mrb[24].mxu0  ;;  %v555_v25 = vpop.f32.mrb[25].mxu1 }
 0x10f   :  { %1685 = vst.msk [vmem:[%s2958_s5 + $0x58] sm:$0xf] %vm1662_vm2, %v1950_v19  ;;  %v1951_v26 = vpack.c.bf16 %v1365_v20, %v1365_v20  ;;  %v1121_v27 = vadd.f32 %v2158_v24, %v2090_v21  ;;  %v1112_v28 = vpop.f32.mrb[25].mxu0  ;;  %v2091_v29 = vpop.f32.mrb[26].mxu1 }
 0x110   :  { %1683 = vst.msk [vmem:[%s2958_s5 + $0x50] sm:$0xf] %vm1662_vm2, %v1948_v22  ;;  %v1949_v30 = vpack.c.bf16 %v1363_v23, %v1363_v23  ;;  %v1113_v31 = vadd.f32 %v1112_v28, %v555_v25  ;;  %v2159_v32 = vpop.f32.mrb[26].mxu0  ;;  %v558_v33 = vpop.f32.mrb[27].mxu1 }
 0x111   :  { %1686 = vst.msk [vmem:[%s2958_s5 + $0x5c] sm:$0xf] %vm1662_vm2, %v1951_v26  ;;  %v1304_v34 = vadd.f32 %v2631_v8, %v1121_v27  ;;  %v1124_v35 = vadd.f32 %v2159_v32, %v2091_v29  ;;  %v1115_v36 = vpop.f32.mrb[27].mxu0 }
 0x112   :  { %1684 = vst.msk [vmem:[%s2958_s5 + $0x54] sm:$0xf] %vm1662_vm2, %v1949_v30  ;;  %v1302_v37 = vadd.f32 %v2631_v8, %v1113_v31  ;;  %v1116_v38 = vadd.f32 %v1115_v36, %v558_v33 }
 0x113   :  { %v1368_v39 = vmax.f32 %v1304_v34, 0.0  ;;  %v1305_v40 = vadd.f32 %v2631_v8, %v1124_v35 }
 0x114   :  { %v1366_v41 = vmax.f32 %v1302_v37, 0.0  ;;  %v1303_v42 = vadd.f32 %v2631_v8, %v1116_v38 }
 0x115   :  { %v1954_v43 = vpack.c.bf16 %v1368_v39, %v1368_v39  ;;  %v1369_v44 = vmax.f32 %v1305_v40, 0.0  ;;  %v2094_v45 = vpop.f32.mrb[28].mxu1 }
 0x116   :  { %v1952_v46 = vpack.c.bf16 %v1366_v41, %v1366_v41  ;;  %v1367_v47 = vmax.f32 %v1303_v42, 0.0  ;;  %v2162_v48 = vpop.f32.mrb[28].mxu0  ;;  %v571_v49 = vpop.f32.mrb[29].mxu1 }
 0x117   :  { %1689 = vst.msk [vmem:[%s2958_s5 + $0x68] sm:$0xf] %vm1662_vm2, %v1954_v43  ;;  %v1955_v50 = vpack.c.bf16 %v1369_v44, %v1369_v44  ;;  %v1137_v51 = vadd.f32 %v2162_v48, %v2094_v45  ;;  %v1128_v52 = vpop.f32.mrb[29].mxu0  ;;  %v2095_v53 = vpop.f32.mrb[30].mxu1 }
 0x118   :  { %1687 = vst.msk [vmem:[%s2958_s5 + $0x60] sm:$0xf] %vm1662_vm2, %v1952_v46  ;;  %v1953_v54 = vpack.c.bf16 %v1367_v47, %v1367_v47  ;;  %v1129_v55 = vadd.f32 %v1128_v52, %v571_v49  ;;  %v2163_v56 = vpop.f32.mrb[30].mxu0  ;;  %v574_v57 = vpop.f32.mrb[31].mxu1 }
 0x119   :  { %1690 = vst.msk [vmem:[%s2958_s5 + $0x6c] sm:$0xf] %vm1662_vm2, %v1955_v50  ;;  %v1308_v58 = vadd.f32 %v2631_v8, %v1137_v51  ;;  %v1140_v59 = vadd.f32 %v2163_v56, %v2095_v53  ;;  %v1131_v60 = vpop.f32.mrb[31].mxu0 }
 0x11a   :  { %1688 = vst.msk [vmem:[%s2958_s5 + $0x64] sm:$0xf] %vm1662_vm2, %v1953_v54  ;;  %v1306_v61 = vadd.f32 %v2631_v8, %v1129_v55  ;;  %v1132_v62 = vadd.f32 %v1131_v60, %v574_v57 }
 0x11b   :  { %v1372_v63 = vmax.f32 %v1308_v58, 0.0  ;;  %v1309_v0 = vadd.f32 %v2631_v8, %v1140_v59 }
 0x11c   :  { %v1370_v1 = vmax.f32 %v1306_v61, 0.0  ;;  %v1307_v2 = vadd.f32 %v2631_v8, %v1132_v62 }
 0x11d   :  { %v1958_v3 = vpack.c.bf16 %v1372_v63, %v1372_v63  ;;  %v1373_v4 = vmax.f32 %v1309_v0, 0.0  ;;  %v2098_v5 = vpop.f32.mrb[32].mxu1 }
 0x11e   :  { %v1956_v6 = vpack.c.bf16 %v1370_v1, %v1370_v1  ;;  %v1371_v7 = vmax.f32 %v1307_v2, 0.0  ;;  %v2166_v9 = vpop.f32.mrb[32].mxu0  ;;  %v587_v10 = vpop.f32.mrb[33].mxu1 }
 0x11f   :  { %1693 = vst.msk [vmem:[%s2958_s5 + $0x78] sm:$0xf] %vm1662_vm2, %v1958_v3  ;;  %v1959_v11 = vpack.c.bf16 %v1373_v4, %v1373_v4  ;;  %v1153_v12 = vadd.f32 %v2166_v9, %v2098_v5  ;;  %v1144_v13 = vpop.f32.mrb[33].mxu0  ;;  %v2099_v14 = vpop.f32.mrb[34].mxu1 }
 0x120   :  { %1691 = vst.msk [vmem:[%s2958_s5 + $0x70] sm:$0xf] %vm1662_vm2, %v1956_v6  ;;  %v1957_v15 = vpack.c.bf16 %v1371_v7, %v1371_v7  ;;  %v1145_v16 = vadd.f32 %v1144_v13, %v587_v10  ;;  %v2167_v17 = vpop.f32.mrb[34].mxu0  ;;  %v590_v18 = vpop.f32.mrb[35].mxu1 }
 0x121   :  { %1694 = vst.msk [vmem:[%s2958_s5 + $0x7c] sm:$0xf] %vm1662_vm2, %v1959_v11  ;;  %v1312_v19 = vadd.f32 %v2631_v8, %v1153_v12  ;;  %v1156_v20 = vadd.f32 %v2167_v17, %v2099_v14  ;;  %v1147_v21 = vpop.f32.mrb[35].mxu0 }
 0x122   :  { %1692 = vst.msk [vmem:[%s2958_s5 + $0x74] sm:$0xf] %vm1662_vm2, %v1957_v15  ;;  %v1310_v22 = vadd.f32 %v2631_v8, %v1145_v16  ;;  %v1148_v23 = vadd.f32 %v1147_v21, %v590_v18 }
 0x123   :  { %v1376_v24 = vmax.f32 %v1312_v19, 0.0  ;;  %v1313_v25 = vadd.f32 %v2631_v8, %v1156_v20 }
 0x124   :  { %v1374_v26 = vmax.f32 %v1310_v22, 0.0  ;;  %v1311_v27 = vadd.f32 %v2631_v8, %v1148_v23 }
 0x125   :  { %v1962_v28 = vpack.c.bf16 %v1376_v24, %v1376_v24  ;;  %v1377_v29 = vmax.f32 %v1313_v25, 0.0  ;;  %v2102_v30 = vpop.f32.mrb[36].mxu1 }
 0x126   :  { %v1960_v31 = vpack.c.bf16 %v1374_v26, %v1374_v26  ;;  %v1375_v32 = vmax.f32 %v1311_v27, 0.0  ;;  %v2170_v33 = vpop.f32.mrb[36].mxu0  ;;  %v603_v34 = vpop.f32.mrb[37].mxu1 }
 0x127   :  { %1697 = vst.msk [vmem:[%s2958_s5 + $0x88] sm:$0xf] %vm1662_vm2, %v1962_v28  ;;  %v1963_v35 = vpack.c.bf16 %v1377_v29, %v1377_v29  ;;  %v1169_v36 = vadd.f32 %v2170_v33, %v2102_v30  ;;  %v1160_v37 = vpop.f32.mrb[37].mxu0  ;;  %v2103_v38 = vpop.f32.mrb[38].mxu1 }
 0x128   :  { %1695 = vst.msk [vmem:[%s2958_s5 + $0x80] sm:$0xf] %vm1662_vm2, %v1960_v31  ;;  %v1961_v39 = vpack.c.bf16 %v1375_v32, %v1375_v32  ;;  %v1161_v40 = vadd.f32 %v1160_v37, %v603_v34  ;;  %v2171_v41 = vpop.f32.mrb[38].mxu0  ;;  %v606_v42 = vpop.f32.mrb[39].mxu1 }
 0x129   :  { %1698 = vst.msk [vmem:[%s2958_s5 + $0x8c] sm:$0xf] %vm1662_vm2, %v1963_v35  ;;  %v1316_v43 = vadd.f32 %v2631_v8, %v1169_v36  ;;  %v1172_v44 = vadd.f32 %v2171_v41, %v2103_v38  ;;  %v1163_v45 = vpop.f32.mrb[39].mxu0 }
 0x12a   :  { %1696 = vst.msk [vmem:[%s2958_s5 + $0x84] sm:$0xf] %vm1662_vm2, %v1961_v39  ;;  %v1314_v46 = vadd.f32 %v2631_v8, %v1161_v40  ;;  %v1164_v47 = vadd.f32 %v1163_v45, %v606_v42 }
 0x12b   :  { %v1380_v48 = vmax.f32 %v1316_v43, 0.0  ;;  %v1317_v49 = vadd.f32 %v2631_v8, %v1172_v44 }
 0x12c   :  { %v1378_v50 = vmax.f32 %v1314_v46, 0.0  ;;  %v1315_v51 = vadd.f32 %v2631_v8, %v1164_v47 }
 0x12d   :  { %v1966_v52 = vpack.c.bf16 %v1380_v48, %v1380_v48  ;;  %v1381_v53 = vmax.f32 %v1317_v49, 0.0  ;;  %v2106_v54 = vpop.f32.mrb[40].mxu1 }
 0x12e   :  { %v1964_v55 = vpack.c.bf16 %v1378_v50, %v1378_v50  ;;  %v1379_v56 = vmax.f32 %v1315_v51, 0.0  ;;  %v2174_v57 = vpop.f32.mrb[40].mxu0  ;;  %v619_v58 = vpop.f32.mrb[41].mxu1 }
 0x12f   :  { %1701 = vst.msk [vmem:[%s2958_s5 + $0x98] sm:$0xf] %vm1662_vm2, %v1966_v52  ;;  %v1967_v59 = vpack.c.bf16 %v1381_v53, %v1381_v53  ;;  %v1185_v60 = vadd.f32 %v2174_v57, %v2106_v54  ;;  %v1176_v61 = vpop.f32.mrb[41].mxu0  ;;  %v2107_v62 = vpop.f32.mrb[42].mxu1 }
 0x130   :  { %1699 = vst.msk [vmem:[%s2958_s5 + $0x90] sm:$0xf] %vm1662_vm2, %v1964_v55  ;;  %v1965_v63 = vpack.c.bf16 %v1379_v56, %v1379_v56  ;;  %v1177_v0 = vadd.f32 %v1176_v61, %v619_v58  ;;  %v2175_v1 = vpop.f32.mrb[42].mxu0  ;;  %v622_v2 = vpop.f32.mrb[43].mxu1 }
 0x131   :  { %1702 = vst.msk [vmem:[%s2958_s5 + $0x9c] sm:$0xf] %vm1662_vm2, %v1967_v59  ;;  %v1320_v3 = vadd.f32 %v2631_v8, %v1185_v60  ;;  %v1188_v4 = vadd.f32 %v2175_v1, %v2107_v62  ;;  %v1179_v5 = vpop.f32.mrb[43].mxu0 }
 0x132   :  { %1700 = vst.msk [vmem:[%s2958_s5 + $0x94] sm:$0xf] %vm1662_vm2, %v1965_v63  ;;  %v1318_v6 = vadd.f32 %v2631_v8, %v1177_v0  ;;  %v1180_v7 = vadd.f32 %v1179_v5, %v622_v2 }
 0x133   :  { %v1384_v9 = vmax.f32 %v1320_v3, 0.0  ;;  %v1321_v10 = vadd.f32 %v2631_v8, %v1188_v4 }
 0x134   :  { %v1382_v11 = vmax.f32 %v1318_v6, 0.0  ;;  %v1319_v12 = vadd.f32 %v2631_v8, %v1180_v7 }
 0x135   :  { %v1970_v13 = vpack.c.bf16 %v1384_v9, %v1384_v9  ;;  %v1385_v14 = vmax.f32 %v1321_v10, 0.0  ;;  %v2110_v15 = vpop.f32.mrb[44].mxu1 }
 0x136   :  { %v1968_v16 = vpack.c.bf16 %v1382_v11, %v1382_v11  ;;  %v1383_v17 = vmax.f32 %v1319_v12, 0.0  ;;  %v2178_v18 = vpop.f32.mrb[44].mxu0  ;;  %v635_v19 = vpop.f32.mrb[45].mxu1 }
 0x137   :  { %1705 = vst.msk [vmem:[%s2958_s5 + $0xa8] sm:$0xf] %vm1662_vm2, %v1970_v13  ;;  %v1971_v20 = vpack.c.bf16 %v1385_v14, %v1385_v14  ;;  %v1201_v21 = vadd.f32 %v2178_v18, %v2110_v15  ;;  %v1192_v22 = vpop.f32.mrb[45].mxu0  ;;  %v2111_v23 = vpop.f32.mrb[46].mxu1 }
 0x138   :  { %1703 = vst.msk [vmem:[%s2958_s5 + $0xa0] sm:$0xf] %vm1662_vm2, %v1968_v16  ;;  %v1969_v24 = vpack.c.bf16 %v1383_v17, %v1383_v17  ;;  %v1193_v25 = vadd.f32 %v1192_v22, %v635_v19  ;;  %v2179_v26 = vpop.f32.mrb[46].mxu0  ;;  %v638_v27 = vpop.f32.mrb[47].mxu1 }
 0x139   :  { %1706 = vst.msk [vmem:[%s2958_s5 + $0xac] sm:$0xf] %vm1662_vm2, %v1971_v20  ;;  %v1324_v28 = vadd.f32 %v2631_v8, %v1201_v21  ;;  %v1204_v29 = vadd.f32 %v2179_v26, %v2111_v23  ;;  %v1195_v30 = vpop.f32.mrb[47].mxu0 }
 0x13a   :  { %1704 = vst.msk [vmem:[%s2958_s5 + $0xa4] sm:$0xf] %vm1662_vm2, %v1969_v24  ;;  %v1322_v31 = vadd.f32 %v2631_v8, %v1193_v25  ;;  %v1196_v32 = vadd.f32 %v1195_v30, %v638_v27 }
 0x13b   :  { %v1388_v33 = vmax.f32 %v1324_v28, 0.0  ;;  %v1325_v34 = vadd.f32 %v2631_v8, %v1204_v29 }
 0x13c   :  { %v1386_v35 = vmax.f32 %v1322_v31, 0.0  ;;  %v1323_v36 = vadd.f32 %v2631_v8, %v1196_v32 }
 0x13d   :  { %v1974_v37 = vpack.c.bf16 %v1388_v33, %v1388_v33  ;;  %v1389_v38 = vmax.f32 %v1325_v34, 0.0  ;;  %v2114_v39 = vpop.f32.mrb[48].mxu1 }
 0x13e   :  { %v1972_v40 = vpack.c.bf16 %v1386_v35, %v1386_v35  ;;  %v1387_v41 = vmax.f32 %v1323_v36, 0.0  ;;  %v2182_v42 = vpop.f32.mrb[48].mxu0  ;;  %v651_v43 = vpop.f32.mrb[49].mxu1 }
 0x13f   :  { %1709 = vst.msk [vmem:[%s2958_s5 + $0xb8] sm:$0xf] %vm1662_vm2, %v1974_v37  ;;  %v1975_v44 = vpack.c.bf16 %v1389_v38, %v1389_v38  ;;  %v1217_v45 = vadd.f32 %v2182_v42, %v2114_v39  ;;  %v1208_v46 = vpop.f32.mrb[49].mxu0  ;;  %v2115_v47 = vpop.f32.mrb[50].mxu1 }
 0x140   :  { %1707 = vst.msk [vmem:[%s2958_s5 + $0xb0] sm:$0xf] %vm1662_vm2, %v1972_v40  ;;  %v1973_v48 = vpack.c.bf16 %v1387_v41, %v1387_v41  ;;  %v1209_v49 = vadd.f32 %v1208_v46, %v651_v43  ;;  %v2183_v50 = vpop.f32.mrb[50].mxu0  ;;  %v654_v51 = vpop.f32.mrb[51].mxu1 }
 0x141   :  { %1710 = vst.msk [vmem:[%s2958_s5 + $0xbc] sm:$0xf] %vm1662_vm2, %v1975_v44  ;;  %v1328_v52 = vadd.f32 %v2631_v8, %v1217_v45  ;;  %v1220_v53 = vadd.f32 %v2183_v50, %v2115_v47  ;;  %v1211_v54 = vpop.f32.mrb[51].mxu0 }
 0x142   :  { %1708 = vst.msk [vmem:[%s2958_s5 + $0xb4] sm:$0xf] %vm1662_vm2, %v1973_v48  ;;  %v1326_v55 = vadd.f32 %v2631_v8, %v1209_v49  ;;  %v1212_v56 = vadd.f32 %v1211_v54, %v654_v51 }
 0x143   :  { %v1392_v57 = vmax.f32 %v1328_v52, 0.0  ;;  %v1329_v58 = vadd.f32 %v2631_v8, %v1220_v53 }
 0x144   :  { %v1390_v59 = vmax.f32 %v1326_v55, 0.0  ;;  %v1327_v60 = vadd.f32 %v2631_v8, %v1212_v56 }
 0x145   :  { %v1978_v61 = vpack.c.bf16 %v1392_v57, %v1392_v57  ;;  %v1393_v62 = vmax.f32 %v1329_v58, 0.0  ;;  %v2118_v63 = vpop.f32.mrb[52].mxu1 }
 0x146   :  { %v1976_v0 = vpack.c.bf16 %v1390_v59, %v1390_v59  ;;  %v1391_v1 = vmax.f32 %v1327_v60, 0.0  ;;  %v2186_v2 = vpop.f32.mrb[52].mxu0  ;;  %v667_v3 = vpop.f32.mrb[53].mxu1 }
 0x147   :  { %1713 = vst.msk [vmem:[%s2958_s5 + $0xc8] sm:$0xf] %vm1662_vm2, %v1978_v61  ;;  %v1979_v4 = vpack.c.bf16 %v1393_v62, %v1393_v62  ;;  %v1233_v5 = vadd.f32 %v2186_v2, %v2118_v63  ;;  %v1224_v6 = vpop.f32.mrb[53].mxu0  ;;  %v2119_v7 = vpop.f32.mrb[54].mxu1 }
 0x148   :  { %1711 = vst.msk [vmem:[%s2958_s5 + $0xc0] sm:$0xf] %vm1662_vm2, %v1976_v0  ;;  %v1977_v9 = vpack.c.bf16 %v1391_v1, %v1391_v1  ;;  %v1225_v10 = vadd.f32 %v1224_v6, %v667_v3  ;;  %v2187_v11 = vpop.f32.mrb[54].mxu0  ;;  %v670_v12 = vpop.f32.mrb[55].mxu1 }
 0x149   :  { %1714 = vst.msk [vmem:[%s2958_s5 + $0xcc] sm:$0xf] %vm1662_vm2, %v1979_v4  ;;  %v1332_v13 = vadd.f32 %v2631_v8, %v1233_v5  ;;  %v1236_v14 = vadd.f32 %v2187_v11, %v2119_v7  ;;  %v1227_v15 = vpop.f32.mrb[55].mxu0 }
 0x14a   :  { %1712 = vst.msk [vmem:[%s2958_s5 + $0xc4] sm:$0xf] %vm1662_vm2, %v1977_v9  ;;  %v1330_v16 = vadd.f32 %v2631_v8, %v1225_v10  ;;  %v1228_v17 = vadd.f32 %v1227_v15, %v670_v12 }
 0x14b   :  { %v1396_v18 = vmax.f32 %v1332_v13, 0.0  ;;  %v1333_v19 = vadd.f32 %v2631_v8, %v1236_v14 }
 0x14c   :  { %v1394_v20 = vmax.f32 %v1330_v16, 0.0  ;;  %v1331_v21 = vadd.f32 %v2631_v8, %v1228_v17 }
 0x14d   :  { %v1982_v22 = vpack.c.bf16 %v1396_v18, %v1396_v18  ;;  %v1397_v23 = vmax.f32 %v1333_v19, 0.0  ;;  %v2122_v24 = vpop.f32.mrb[56].mxu1 }
 0x14e   :  { %v1980_v25 = vpack.c.bf16 %v1394_v20, %v1394_v20  ;;  %v1395_v26 = vmax.f32 %v1331_v21, 0.0  ;;  %v2190_v27 = vpop.f32.mrb[56].mxu0  ;;  %v683_v28 = vpop.f32.mrb[57].mxu1 }
 0x14f   :  { %1717 = vst.msk [vmem:[%s2958_s5 + $0xd8] sm:$0xf] %vm1662_vm2, %v1982_v22  ;;  %v1983_v29 = vpack.c.bf16 %v1397_v23, %v1397_v23  ;;  %v1249_v30 = vadd.f32 %v2190_v27, %v2122_v24  ;;  %v1240_v31 = vpop.f32.mrb[57].mxu0  ;;  %v2123_v32 = vpop.f32.mrb[58].mxu1 }
 0x150   :  { %1715 = vst.msk [vmem:[%s2958_s5 + $0xd0] sm:$0xf] %vm1662_vm2, %v1980_v25  ;;  %v1981_v33 = vpack.c.bf16 %v1395_v26, %v1395_v26  ;;  %v1241_v34 = vadd.f32 %v1240_v31, %v683_v28  ;;  %v2191_v35 = vpop.f32.mrb[58].mxu0  ;;  %v686_v36 = vpop.f32.mrb[59].mxu1 }
 0x151   :  { %1718 = vst.msk [vmem:[%s2958_s5 + $0xdc] sm:$0xf] %vm1662_vm2, %v1983_v29  ;;  %v1336_v37 = vadd.f32 %v2631_v8, %v1249_v30  ;;  %v1252_v38 = vadd.f32 %v2191_v35, %v2123_v32  ;;  %v1243_v39 = vpop.f32.mrb[59].mxu0 }
 0x152   :  { %1716 = vst.msk [vmem:[%s2958_s5 + $0xd4] sm:$0xf] %vm1662_vm2, %v1981_v33  ;;  %v1334_v40 = vadd.f32 %v2631_v8, %v1241_v34  ;;  %v1244_v41 = vadd.f32 %v1243_v39, %v686_v36 }
 0x153   :  { %v1400_v42 = vmax.f32 %v1336_v37, 0.0  ;;  %v1337_v43 = vadd.f32 %v2631_v8, %v1252_v38 }
 0x154   :  { %v1398_v44 = vmax.f32 %v1334_v40, 0.0  ;;  %v1335_v45 = vadd.f32 %v2631_v8, %v1244_v41 }
 0x155   :  { %v1986_v46 = vpack.c.bf16 %v1400_v42, %v1400_v42  ;;  %v1401_v47 = vmax.f32 %v1337_v43, 0.0  ;;  %v2126_v48 = vpop.f32.mrb[60].mxu1 }
 0x156   :  { %v1984_v49 = vpack.c.bf16 %v1398_v44, %v1398_v44  ;;  %v1399_v50 = vmax.f32 %v1335_v45, 0.0  ;;  %v2194_v51 = vpop.f32.mrb[60].mxu0  ;;  %v699_v52 = vpop.f32.mrb[61].mxu1 }
 0x157   :  { %1721 = vst.msk [vmem:[%s2958_s5 + $0xe8] sm:$0xf] %vm1662_vm2, %v1986_v46  ;;  %v1987_v53 = vpack.c.bf16 %v1401_v47, %v1401_v47  ;;  %v1265_v54 = vadd.f32 %v2194_v51, %v2126_v48  ;;  %v1256_v55 = vpop.f32.mrb[61].mxu0  ;;  %v2127_v56 = vpop.f32.mrb[62].mxu1 }
 0x158   :  { %1719 = vst.msk [vmem:[%s2958_s5 + $0xe0] sm:$0xf] %vm1662_vm2, %v1984_v49  ;;  %v1985_v57 = vpack.c.bf16 %v1399_v50, %v1399_v50  ;;  %v1257_v58 = vadd.f32 %v1256_v55, %v699_v52  ;;  %v2195_v59 = vpop.f32.mrb[62].mxu0  ;;  %v702_v60 = vpop.f32.mrb[63].mxu1 }
 0x159   :  { %1722 = vst.msk [vmem:[%s2958_s5 + $0xec] sm:$0xf] %vm1662_vm2, %v1987_v53  ;;  %v1340_v61 = vadd.f32 %v2631_v8, %v1265_v54  ;;  %v1268_v62 = vadd.f32 %v2195_v59, %v2127_v56  ;;  %v1259_v63 = vpop.f32.mrb[63].mxu0 }
 0x15a   :  { %1720 = vst.msk [vmem:[%s2958_s5 + $0xe4] sm:$0xf] %vm1662_vm2, %v1985_v57  ;;  %v1338_v0 = vadd.f32 %v2631_v8, %v1257_v58  ;;  %v1260_v1 = vadd.f32 %v1259_v63, %v702_v60 }
 0x15b   :  { %v1404_v2 = vmax.f32 %v1340_v61, 0.0  ;;  %v1341_v3 = vadd.f32 %v2631_v8, %v1268_v62 }
 0x15c   :  { %v1402_v4 = vmax.f32 %v1338_v0, 0.0  ;;  %v1339_v5 = vadd.f32 %v2631_v8, %v1260_v1 }
 0x15d   :  { %v1990_v6 = vpack.c.bf16 %v1404_v2, %v1404_v2  ;;  %v1405_v7 = vmax.f32 %v1341_v3, 0.0 }
 0x15e   :  { %v1988_v9 = vpack.c.bf16 %v1402_v4, %v1402_v4  ;;  %v1403_v10 = vmax.f32 %v1339_v5, 0.0 }
 0x15f   :  { %1725 = vst.msk [vmem:[%s2958_s5 + $0xf8] sm:$0xf] %vm1662_vm2, %v1990_v6  ;;  %v1991_v11 = vpack.c.bf16 %v1405_v7, %v1405_v7 }
 0x160   :  { %1723 = vst.msk [vmem:[%s2958_s5 + $0xf0] sm:$0xf] %vm1662_vm2, %v1988_v9  ;;  %v1989_v12 = vpack.c.bf16 %v1403_v10, %v1403_v10 }
 0x161   :  { %1726 = vst.msk [vmem:[%s2958_s5 + $0xfc] sm:$0xf] %vm1662_vm2, %v1991_v11 }
 0x162   :  { %1724 = vst.msk [vmem:[%s2958_s5 + $0xf4] sm:$0xf] %vm1662_vm2, %v1989_v12 }

// kernel: _lambda_.5
= control target key start
LH: loop header
LB: loop body
LE: loop exit
PB: predicated region body
PF: predicated region fallthrough
CT: control target
= control target key end

     0   :  { %vm210_vm0 = vcmask 293888   ;;  %vm283_vm1 = vcmask 1041408   ;;  %vm560_vm2 = vcmask 31744   ;;  %s1151_s1 = inlined_call_operand.vmem [shape: bf16[36,4], index: 1, kind: input, shape index: {}]   ;;  %s1152_s0 = inlined_call_operand.vmem [shape: bf16[384,36], index: 0, kind: input, shape index: {}]   ;;  %s1153_s2 = inlined_call_operand.vmem [shape: f32[1,4], index: 2, kind: input, shape index: {}]   ;;  %s1154_s3 = inlined_call_operand.vmem [shape: f32[384,4], index: 3, kind: output, shape index: {}]  }
   0x1   :  { %v754_v0 = vld [vmem:[%s1151_s1] sm:$0xff]   ;;  %v755_v1 = vld [vmem:[%s1151_s1 + $0x8] sm:$0xff]   ;;  %v756_v2 = vld [vmem:[%s1151_s1 + $0x10] ss:$0 sps:$4 sm:$0x33]  }
   0x2   :  { %692 = vmatprep.subr.bf16.mxu0 %v754_v0  ;;  %746 = vmatprep.subr.bf16.mxu1 %v754_v0  ;;  %v757_v3 = vld [vmem:[%s1152_s0] sm:$0xff]   ;;  %v285_v5 = vsel %vm283_vm1, %v756_v2, 0  ;;  %v759_v6 = vld [vmem:[%s1152_s0 + $0x8] sm:$0xff]   ;;  %v761_v8 = vld [vmem:[%s1152_s0 + $0x10] sm:$0xff]  }
   0x3   :  { %693 = vmatpush3.bf16.msra.mxu0 %v754_v0  ;;  %749 = vmatpush3.bf16.msra.mxu1 %v754_v0  ;;  %v758_v4 = vld [vmem:[%s1152_s0 + $0x60] sm:$0xff]   ;;  %v760_v7 = vld [vmem:[%s1152_s0 + $0x68] sm:$0xff]   ;;  %v762_v9 = vld [vmem:[%s1152_s0 + $0x70] sm:$0xff]  }
   0x4   :  { %694 = vmatprep.subr.bf16.mxu0 %v755_v1  ;;  %747 = vmatprep.subr.bf16.mxu1 %v755_v1  ;;  %v763_v10 = vld [vmem:[%s1152_s0 + $0x18] sm:$0xff]   ;;  %v765_v12 = vld [vmem:[%s1152_s0 + $0x20] sm:$0xff]   ;;  %v767_v14 = vld [vmem:[%s1152_s0 + $0x28] sm:$0xff]  }
   0x5   :  { %698 = vmatprep.mubr.msk.bf16.mxu0 %vm210_vm0, %v757_v3  ;;  %722 = vmatprep.mubr.msk.bf16.mxu1 %vm210_vm0, %v758_v4  ;;  %v764_v11 = vld [vmem:[%s1152_s0 + $0x78] sm:$0xff]   ;;  %v766_v13 = vld [vmem:[%s1152_s0 + $0x80] sm:$0xff]   ;;  %v768_v15 = vld [vmem:[%s1152_s0 + $0x88] sm:$0xff]  }
   0x6   :  { %v769_v16 = vld [vmem:[%s1152_s0 + $0x30] sm:$0xff]   ;;  %v771_v18 = vld [vmem:[%s1152_s0 + $0x38] sm:$0xff]   ;;  %v773_v20 = vld [vmem:[%s1152_s0 + $0x40] sm:$0xff]  }
   0x7   :  { %695 = vmatpush3.bf16.msra.mxu0 %v755_v1  ;;  %750 = vmatpush3.bf16.msra.mxu1 %v755_v1  ;;  %v770_v17 = vld [vmem:[%s1152_s0 + $0x90] sm:$0xff]   ;;  %v772_v19 = vld [vmem:[%s1152_s0 + $0x98] sm:$0xff]   ;;  %v774_v21 = vld [vmem:[%s1152_s0 + $0xa0] sm:$0xff]  }
   0x8   :  { %752 = vmatprep.subr.msk.bf16.mxu0 %vm283_vm1, %v756_v2  ;;  %753 = vmatprep.subr.msk.bf16.mxu1 %vm283_vm1, %v756_v2  ;;  %v775_v22 = vld [vmem:[%s1152_s0 + $0x48] sm:$0xff]   ;;  %v777_v24 = vld [vmem:[%s1152_s0 + $0x50] sm:$0xff]   ;;  %v779_v26 = vld [vmem:[%s1152_s0 + $0x58] sm:$0xff]  }
   0x9   :  { %v776_v23 = vld [vmem:[%s1152_s0 + $0xa8] sm:$0xff]   ;;  %v778_v25 = vld [vmem:[%s1152_s0 + $0xb0] sm:$0xff]   ;;  %v780_v27 = vld [vmem:[%s1152_s0 + $0xb8] sm:$0xff]  }
   0xa   :  { %v909_v28 = vld [vmem:[%s1153_s2] ss:$0 sm:$0xff] }
   0xb   :  { %697 = vmatpush3.bf16.msra.mxu0 %v285_v5  ;;  %751 = vmatpush3.bf16.msra.mxu1 %v285_v5 }
   0xe   :  { %699 = vmatmul.mubr.msk.bf16.vlgmr.msra.gmra.mrb[0].mxu0 %vm210_vm0, %v759_v6  ;;  %723 = vmatmul.mubr.msk.bf16.vlgmr.msra.gmra.mrb[0].mxu1 %vm210_vm0, %v760_v7 }
   0xf   :  { %702 = vmatprep.mubr.msk.bf16.mxu0 %vm210_vm0, %v761_v8  ;;  %726 = vmatprep.mubr.msk.bf16.mxu1 %vm210_vm0, %v762_v9 }
  0x16   :  { %703 = vmatmul.mubr.msk.bf16.gmra.mrb[4].mxu0 %vm210_vm0, %v763_v10  ;;  %727 = vmatmul.mubr.msk.bf16.gmra.mrb[4].mxu1 %vm210_vm0, %v764_v11 }
  0x17   :  { %706 = vmatprep.mubr.msk.bf16.mxu0 %vm210_vm0, %v765_v12  ;;  %730 = vmatprep.mubr.msk.bf16.mxu1 %vm210_vm0, %v766_v13 }
  0x1e   :  { %707 = vmatmul.mubr.msk.bf16.gmra.mrb[8].mxu0 %vm210_vm0, %v767_v14  ;;  %731 = vmatmul.mubr.msk.bf16.gmra.mrb[8].mxu1 %vm210_vm0, %v768_v15 }
  0x1f   :  { %710 = vmatprep.mubr.msk.bf16.mxu0 %vm210_vm0, %v769_v16  ;;  %734 = vmatprep.mubr.msk.bf16.mxu1 %vm210_vm0, %v770_v17 }
  0x26   :  { %711 = vmatmul.mubr.msk.bf16.gmra.mrb[12].mxu0 %vm210_vm0, %v771_v18  ;;  %735 = vmatmul.mubr.msk.bf16.gmra.mrb[12].mxu1 %vm210_vm0, %v772_v19 }
  0x27   :  { %714 = vmatprep.mubr.msk.bf16.mxu0 %vm210_vm0, %v773_v20  ;;  %738 = vmatprep.mubr.msk.bf16.mxu1 %vm210_vm0, %v774_v21 }
  0x2e   :  { %715 = vmatmul.mubr.msk.bf16.gmra.mrb[16].mxu0 %vm210_vm0, %v775_v22  ;;  %739 = vmatmul.mubr.msk.bf16.gmra.mrb[16].mxu1 %vm210_vm0, %v776_v23 }
  0x2f   :  { %718 = vmatprep.mubr.msk.bf16.mxu0 %vm210_vm0, %v777_v24  ;;  %742 = vmatprep.mubr.msk.bf16.mxu1 %vm210_vm0, %v778_v25 }
  0x36   :  { %719 = vmatmul.mubr.msk.bf16.gmra.mrb[20].mxu0 %vm210_vm0, %v779_v26  ;;  %743 = vmatmul.mubr.msk.bf16.gmra.mrb[20].mxu1 %vm210_vm0, %v780_v27 }
  0xe1   :  { %v700_v29 = vpop.f32.mrb[0].mxu0  ;;  %v724_v30 = vpop.f32.mrb[0].mxu1 }
  0xe2   :  { %v330_v31 = vadd.f32 %v700_v29, %v909_v28  ;;  %v426_v32 = vadd.f32 %v724_v30, %v909_v28  ;;  %v321_v33 = vpop.f32.mrb[1].mxu0  ;;  %v417_v34 = vpop.f32.mrb[1].mxu1 }
  0xe3   :  { %v322_v35 = vadd.f32 %v909_v28, %v321_v33  ;;  %v418_v36 = vadd.f32 %v909_v28, %v417_v34  ;;  %v701_v37 = vpop.f32.mrb[2].mxu0  ;;  %v725_v38 = vpop.f32.mrb[2].mxu1 }
  0xe4   :  { %v514_v39 = vmax.f32 %v330_v31, 0.0  ;;  %v538_v40 = vmax.f32 %v426_v32, 0.0  ;;  %v333_v41 = vadd.f32 %v701_v37, %v909_v28  ;;  %v429_v42 = vadd.f32 %v725_v38, %v909_v28  ;;  %v324_v43 = vpop.f32.mrb[3].mxu0  ;;  %v420_v44 = vpop.f32.mrb[3].mxu1 }
  0xe5   :  { %v512_v45 = vmax.f32 %v322_v35, 0.0  ;;  %v536_v46 = vmax.f32 %v418_v36, 0.0  ;;  %v325_v47 = vadd.f32 %v909_v28, %v324_v43  ;;  %v421_v48 = vadd.f32 %v909_v28, %v420_v44 }
  0xe6   :  { %563 = vst.msk [vmem:[%s1154_s3 + $0x10] sm:$0xff] %vm560_vm2, %v514_v39  ;;  %587 = vst.msk [vmem:[%s1154_s3 + $0xd0] sm:$0xff] %vm560_vm2, %v538_v40  ;;  %v515_v49 = vmax.f32 %v333_v41, 0.0  ;;  %v539_v50 = vmax.f32 %v429_v42, 0.0 }
  0xe7   :  { %561 = vst.msk [vmem:[%s1154_s3] sm:$0xff] %vm560_vm2, %v512_v45  ;;  %585 = vst.msk [vmem:[%s1154_s3 + $0xc0] sm:$0xff] %vm560_vm2, %v536_v46  ;;  %v513_v51 = vmax.f32 %v325_v47, 0.0  ;;  %v537_v52 = vmax.f32 %v421_v48, 0.0 }
  0xe8   :  { %564 = vst.msk [vmem:[%s1154_s3 + $0x18] sm:$0xff] %vm560_vm2, %v515_v49  ;;  %588 = vst.msk [vmem:[%s1154_s3 + $0xd8] sm:$0xff] %vm560_vm2, %v539_v50 }
  0xe9   :  { %562 = vst.msk [vmem:[%s1154_s3 + $0x8] sm:$0xff] %vm560_vm2, %v513_v51  ;;  %586 = vst.msk [vmem:[%s1154_s3 + $0xc8] sm:$0xff] %vm560_vm2, %v537_v52  ;;  %v704_v53 = vpop.f32.mrb[4].mxu0  ;;  %v728_v54 = vpop.f32.mrb[4].mxu1 }
  0xea   :  { %v346_v55 = vadd.f32 %v704_v53, %v909_v28  ;;  %v442_v56 = vadd.f32 %v728_v54, %v909_v28  ;;  %v337_v57 = vpop.f32.mrb[5].mxu0  ;;  %v433_v58 = vpop.f32.mrb[5].mxu1 }
  0xeb   :  { %v338_v59 = vadd.f32 %v909_v28, %v337_v57  ;;  %v434_v60 = vadd.f32 %v909_v28, %v433_v58  ;;  %v705_v61 = vpop.f32.mrb[6].mxu0  ;;  %v729_v62 = vpop.f32.mrb[6].mxu1 }
  0xec   :  { %v518_v63 = vmax.f32 %v346_v55, 0.0  ;;  %v542_v0 = vmax.f32 %v442_v56, 0.0  ;;  %v349_v1 = vadd.f32 %v705_v61, %v909_v28  ;;  %v445_v2 = vadd.f32 %v729_v62, %v909_v28  ;;  %v340_v3 = vpop.f32.mrb[7].mxu0  ;;  %v436_v4 = vpop.f32.mrb[7].mxu1 }
  0xed   :  { %v516_v5 = vmax.f32 %v338_v59, 0.0  ;;  %v540_v6 = vmax.f32 %v434_v60, 0.0  ;;  %v341_v7 = vadd.f32 %v909_v28, %v340_v3  ;;  %v437_v8 = vadd.f32 %v909_v28, %v436_v4 }
  0xee   :  { %567 = vst.msk [vmem:[%s1154_s3 + $0x30] sm:$0xff] %vm560_vm2, %v518_v63  ;;  %591 = vst.msk [vmem:[%s1154_s3 + $0xf0] sm:$0xff] %vm560_vm2, %v542_v0  ;;  %v519_v9 = vmax.f32 %v349_v1, 0.0  ;;  %v543_v10 = vmax.f32 %v445_v2, 0.0 }
  0xef   :  { %565 = vst.msk [vmem:[%s1154_s3 + $0x20] sm:$0xff] %vm560_vm2, %v516_v5  ;;  %589 = vst.msk [vmem:[%s1154_s3 + $0xe0] sm:$0xff] %vm560_vm2, %v540_v6  ;;  %v517_v11 = vmax.f32 %v341_v7, 0.0  ;;  %v541_v12 = vmax.f32 %v437_v8, 0.0 }
  0xf0   :  { %568 = vst.msk [vmem:[%s1154_s3 + $0x38] sm:$0xff] %vm560_vm2, %v519_v9  ;;  %592 = vst.msk [vmem:[%s1154_s3 + $0xf8] sm:$0xff] %vm560_vm2, %v543_v10 }
  0xf1   :  { %566 = vst.msk [vmem:[%s1154_s3 + $0x28] sm:$0xff] %vm560_vm2, %v517_v11  ;;  %590 = vst.msk [vmem:[%s1154_s3 + $0xe8] sm:$0xff] %vm560_vm2, %v541_v12  ;;  %v708_v13 = vpop.f32.mrb[8].mxu0  ;;  %v732_v14 = vpop.f32.mrb[8].mxu1 }
  0xf2   :  { %v362_v15 = vadd.f32 %v708_v13, %v909_v28  ;;  %v458_v16 = vadd.f32 %v732_v14, %v909_v28  ;;  %v353_v17 = vpop.f32.mrb[9].mxu0  ;;  %v449_v18 = vpop.f32.mrb[9].mxu1 }
  0xf3   :  { %v354_v19 = vadd.f32 %v909_v28, %v353_v17  ;;  %v450_v20 = vadd.f32 %v909_v28, %v449_v18  ;;  %v709_v21 = vpop.f32.mrb[10].mxu0  ;;  %v733_v22 = vpop.f32.mrb[10].mxu1 }
  0xf4   :  { %v522_v23 = vmax.f32 %v362_v15, 0.0  ;;  %v546_v24 = vmax.f32 %v458_v16, 0.0  ;;  %v365_v25 = vadd.f32 %v709_v21, %v909_v28  ;;  %v461_v26 = vadd.f32 %v733_v22, %v909_v28  ;;  %v356_v27 = vpop.f32.mrb[11].mxu0  ;;  %v452_v29 = vpop.f32.mrb[11].mxu1 }
  0xf5   :  { %v520_v30 = vmax.f32 %v354_v19, 0.0  ;;  %v544_v31 = vmax.f32 %v450_v20, 0.0  ;;  %v357_v32 = vadd.f32 %v909_v28, %v356_v27  ;;  %v453_v33 = vadd.f32 %v909_v28, %v452_v29 }
  0xf6   :  { %571 = vst.msk [vmem:[%s1154_s3 + $0x50] sm:$0xff] %vm560_vm2, %v522_v23  ;;  %595 = vst.msk [vmem:[%s1154_s3 + $0x110] sm:$0xff] %vm560_vm2, %v546_v24  ;;  %v523_v34 = vmax.f32 %v365_v25, 0.0  ;;  %v547_v35 = vmax.f32 %v461_v26, 0.0 }
  0xf7   :  { %569 = vst.msk [vmem:[%s1154_s3 + $0x40] sm:$0xff] %vm560_vm2, %v520_v30  ;;  %593 = vst.msk [vmem:[%s1154_s3 + $0x100] sm:$0xff] %vm560_vm2, %v544_v31  ;;  %v521_v36 = vmax.f32 %v357_v32, 0.0  ;;  %v545_v37 = vmax.f32 %v453_v33, 0.0 }
  0xf8   :  { %572 = vst.msk [vmem:[%s1154_s3 + $0x58] sm:$0xff] %vm560_vm2, %v523_v34  ;;  %596 = vst.msk [vmem:[%s1154_s3 + $0x118] sm:$0xff] %vm560_vm2, %v547_v35 }
  0xf9   :  { %570 = vst.msk [vmem:[%s1154_s3 + $0x48] sm:$0xff] %vm560_vm2, %v521_v36  ;;  %594 = vst.msk [vmem:[%s1154_s3 + $0x108] sm:$0xff] %vm560_vm2, %v545_v37  ;;  %v712_v38 = vpop.f32.mrb[12].mxu0  ;;  %v736_v39 = vpop.f32.mrb[12].mxu1 }
  0xfa   :  { %v378_v40 = vadd.f32 %v712_v38, %v909_v28  ;;  %v474_v41 = vadd.f32 %v736_v39, %v909_v28  ;;  %v369_v42 = vpop.f32.mrb[13].mxu0  ;;  %v465_v43 = vpop.f32.mrb[13].mxu1 }
  0xfb   :  { %v370_v44 = vadd.f32 %v909_v28, %v369_v42  ;;  %v466_v45 = vadd.f32 %v909_v28, %v465_v43  ;;  %v713_v46 = vpop.f32.mrb[14].mxu0  ;;  %v737_v47 = vpop.f32.mrb[14].mxu1 }
  0xfc   :  { %v526_v48 = vmax.f32 %v378_v40, 0.0  ;;  %v550_v49 = vmax.f32 %v474_v41, 0.0  ;;  %v381_v50 = vadd.f32 %v713_v46, %v909_v28  ;;  %v477_v51 = vadd.f32 %v737_v47, %v909_v28  ;;  %v372_v52 = vpop.f32.mrb[15].mxu0  ;;  %v468_v53 = vpop.f32.mrb[15].mxu1 }
  0xfd   :  { %v524_v54 = vmax.f32 %v370_v44, 0.0  ;;  %v548_v55 = vmax.f32 %v466_v45, 0.0  ;;  %v373_v56 = vadd.f32 %v909_v28, %v372_v52  ;;  %v469_v57 = vadd.f32 %v909_v28, %v468_v53 }
  0xfe   :  { %575 = vst.msk [vmem:[%s1154_s3 + $0x70] sm:$0xff] %vm560_vm2, %v526_v48  ;;  %599 = vst.msk [vmem:[%s1154_s3 + $0x130] sm:$0xff] %vm560_vm2, %v550_v49  ;;  %v527_v58 = vmax.f32 %v381_v50, 0.0  ;;  %v551_v59 = vmax.f32 %v477_v51, 0.0 }
  0xff   :  { %573 = vst.msk [vmem:[%s1154_s3 + $0x60] sm:$0xff] %vm560_vm2, %v524_v54  ;;  %597 = vst.msk [vmem:[%s1154_s3 + $0x120] sm:$0xff] %vm560_vm2, %v548_v55  ;;  %v525_v60 = vmax.f32 %v373_v56, 0.0  ;;  %v549_v61 = vmax.f32 %v469_v57, 0.0 }
 0x100   :  { %576 = vst.msk [vmem:[%s1154_s3 + $0x78] sm:$0xff] %vm560_vm2, %v527_v58  ;;  %600 = vst.msk [vmem:[%s1154_s3 + $0x138] sm:$0xff] %vm560_vm2, %v551_v59 }
 0x101   :  { %574 = vst.msk [vmem:[%s1154_s3 + $0x68] sm:$0xff] %vm560_vm2, %v525_v60  ;;  %598 = vst.msk [vmem:[%s1154_s3 + $0x128] sm:$0xff] %vm560_vm2, %v549_v61  ;;  %v716_v62 = vpop.f32.mrb[16].mxu0  ;;  %v740_v63 = vpop.f32.mrb[16].mxu1 }
 0x102   :  { %v394_v0 = vadd.f32 %v716_v62, %v909_v28  ;;  %v490_v1 = vadd.f32 %v740_v63, %v909_v28  ;;  %v385_v2 = vpop.f32.mrb[17].mxu0  ;;  %v481_v3 = vpop.f32.mrb[17].mxu1 }
 0x103   :  { %v386_v4 = vadd.f32 %v909_v28, %v385_v2  ;;  %v482_v5 = vadd.f32 %v909_v28, %v481_v3  ;;  %v717_v6 = vpop.f32.mrb[18].mxu0  ;;  %v741_v7 = vpop.f32.mrb[18].mxu1 }
 0x104   :  { %v530_v8 = vmax.f32 %v394_v0, 0.0  ;;  %v554_v9 = vmax.f32 %v490_v1, 0.0  ;;  %v397_v10 = vadd.f32 %v717_v6, %v909_v28  ;;  %v493_v11 = vadd.f32 %v741_v7, %v909_v28  ;;  %v388_v12 = vpop.f32.mrb[19].mxu0  ;;  %v484_v13 = vpop.f32.mrb[19].mxu1 }
 0x105   :  { %v528_v14 = vmax.f32 %v386_v4, 0.0  ;;  %v552_v15 = vmax.f32 %v482_v5, 0.0  ;;  %v389_v16 = vadd.f32 %v909_v28, %v388_v12  ;;  %v485_v17 = vadd.f32 %v909_v28, %v484_v13 }
 0x106   :  { %579 = vst.msk [vmem:[%s1154_s3 + $0x90] sm:$0xff] %vm560_vm2, %v530_v8  ;;  %603 = vst.msk [vmem:[%s1154_s3 + $0x150] sm:$0xff] %vm560_vm2, %v554_v9  ;;  %v531_v18 = vmax.f32 %v397_v10, 0.0  ;;  %v555_v19 = vmax.f32 %v493_v11, 0.0 }
 0x107   :  { %577 = vst.msk [vmem:[%s1154_s3 + $0x80] sm:$0xff] %vm560_vm2, %v528_v14  ;;  %601 = vst.msk [vmem:[%s1154_s3 + $0x140] sm:$0xff] %vm560_vm2, %v552_v15  ;;  %v529_v20 = vmax.f32 %v389_v16, 0.0  ;;  %v553_v21 = vmax.f32 %v485_v17, 0.0 }
 0x108   :  { %580 = vst.msk [vmem:[%s1154_s3 + $0x98] sm:$0xff] %vm560_vm2, %v531_v18  ;;  %604 = vst.msk [vmem:[%s1154_s3 + $0x158] sm:$0xff] %vm560_vm2, %v555_v19 }
 0x109   :  { %578 = vst.msk [vmem:[%s1154_s3 + $0x88] sm:$0xff] %vm560_vm2, %v529_v20  ;;  %602 = vst.msk [vmem:[%s1154_s3 + $0x148] sm:$0xff] %vm560_vm2, %v553_v21  ;;  %v720_v22 = vpop.f32.mrb[20].mxu0  ;;  %v744_v23 = vpop.f32.mrb[20].mxu1 }
 0x10a   :  { %v410_v24 = vadd.f32 %v720_v22, %v909_v28  ;;  %v506_v25 = vadd.f32 %v744_v23, %v909_v28  ;;  %v401_v26 = vpop.f32.mrb[21].mxu0  ;;  %v497_v27 = vpop.f32.mrb[21].mxu1 }
 0x10b   :  { %v402_v29 = vadd.f32 %v909_v28, %v401_v26  ;;  %v498_v30 = vadd.f32 %v909_v28, %v497_v27  ;;  %v721_v31 = vpop.f32.mrb[22].mxu0  ;;  %v745_v32 = vpop.f32.mrb[22].mxu1 }
 0x10c   :  { %v534_v33 = vmax.f32 %v410_v24, 0.0  ;;  %v558_v34 = vmax.f32 %v506_v25, 0.0  ;;  %v413_v35 = vadd.f32 %v721_v31, %v909_v28  ;;  %v509_v36 = vadd.f32 %v745_v32, %v909_v28  ;;  %v404_v37 = vpop.f32.mrb[23].mxu0  ;;  %v500_v38 = vpop.f32.mrb[23].mxu1 }
 0x10d   :  { %v532_v39 = vmax.f32 %v402_v29, 0.0  ;;  %v556_v40 = vmax.f32 %v498_v30, 0.0  ;;  %v405_v41 = vadd.f32 %v909_v28, %v404_v37  ;;  %v501_v42 = vadd.f32 %v909_v28, %v500_v38 }
 0x10e   :  { %583 = vst.msk [vmem:[%s1154_s3 + $0xb0] sm:$0xff] %vm560_vm2, %v534_v33  ;;  %607 = vst.msk [vmem:[%s1154_s3 + $0x170] sm:$0xff] %vm560_vm2, %v558_v34  ;;  %v535_v43 = vmax.f32 %v413_v35, 0.0  ;;  %v559_v44 = vmax.f32 %v509_v36, 0.0 }
 0x10f   :  { %581 = vst.msk [vmem:[%s1154_s3 + $0xa0] sm:$0xff] %vm560_vm2, %v532_v39  ;;  %605 = vst.msk [vmem:[%s1154_s3 + $0x160] sm:$0xff] %vm560_vm2, %v556_v40  ;;  %v533_v28 = vmax.f32 %v405_v41, 0.0  ;;  %v557_v45 = vmax.f32 %v501_v42, 0.0 }
 0x110   :  { %584 = vst.msk [vmem:[%s1154_s3 + $0xb8] sm:$0xff] %vm560_vm2, %v535_v43  ;;  %608 = vst.msk [vmem:[%s1154_s3 + $0x178] sm:$0xff] %vm560_vm2, %v559_v44 }
 0x111   :  { %582 = vst.msk [vmem:[%s1154_s3 + $0xa8] sm:$0xff] %vm560_vm2, %v533_v28  ;;  %606 = vst.msk [vmem:[%s1154_s3 + $0x168] sm:$0xff] %vm560_vm2, %v557_v45 }

</bundles_post_ra>
